<compile_context>
chip_gen: v5e
topology: v5e:2x2
jax: 0.10.0
libtpu: 0.0.40
codegen_flags: <defaults>
</compile_context>

<pallas_src>
import functools

import jax
import jax.numpy as jnp
import numpy as np
from jax import lax
from jax.experimental import pallas as pl
from jax.experimental.pallas import tpu as pltpu

_PDIST_EPS = 1e-12   # clamp eps used by RKDLoss.pdist
_NORM_EPS = 1e-12    # eps of F.normalize(p=2, dim=2)


def _smooth_l1(pred, target):
    """Elementwise smooth-L1 (beta=1.0), i.e. F.smooth_l1_loss before the mean."""
    a = jnp.abs(pred - target)
    return jnp.where(a < 1.0, 0.5 * a * a, a - 0.5)


def _sum_all(x):
    """Full reduction to a (1, 1) array (keepdims everywhere, no rank-0 values)."""
    return jnp.sum(jnp.sum(x, axis=1, keepdims=True), axis=0, keepdims=True)


# --------------------------------- kernel -----------------------------------

def _rkd_loss_kernel(s_ref, t_ref, out_ref, *, w_d, w_a):
    B, D = s_ref.shape
    BB = B * B

    s = s_ref[...]                       # (B, D) f32, loaded once
    t = t_ref[...]

    # ----------------------------- masks (built once) -----------------------
    ri = lax.broadcasted_iota(jnp.int32, (B, B), 0)
    ci = lax.broadcasted_iota(jnp.int32, (B, B), 1)
    eye = ri == ci

    rr = lax.broadcasted_iota(jnp.int32, (BB, BB), 0)
    cc = lax.broadcasted_iota(jnp.int32, (BB, BB), 1)
    if B & (B - 1) == 0:                 # power-of-two batch: shift, not div
        sh = B.bit_length() - 1
        blk = (rr >> sh) == (cc >> sh)   # block-diagonal (same anchor i) mask
    else:
        blk = (rr // B) == (cc // B)

    # ------------------ distance term: one Gram matmul per input ------------
    def norm_pdist(x):
        g = lax.dot_general(x, x, (((1,), (1,)), ((), ())),
                            preferred_element_type=jnp.float32)       # (B, B)
        diag = jnp.where(eye, g, 0.0)
        d_col = jnp.sum(diag, axis=1, keepdims=True)                  # (B, 1)
        d_row = jnp.sum(diag, axis=0, keepdims=True)                  # (1, B)
        dist = jnp.sqrt(jnp.maximum(d_col + d_row - 2.0 * g, _PDIST_EPS))
        dist = jnp.where(eye, 0.0, dist)                              # zero diag
        pos = dist > 0.0
        mean_pos = (_sum_all(jnp.where(pos, dist, 0.0)) /
                    _sum_all(jnp.where(pos, 1.0, 0.0)))               # (1, 1)
        return dist / mean_pos

    loss_d = _sum_all(_smooth_l1(norm_pdist(s), norm_pdist(t))) / float(B * B)

    # -------- angle term: one big (B^2, D) . (D, B^2) matmul per input ------
    def angle_gram(x):
        # rows i*B + j hold x[j] - x[i]  (explicit differences, torch-faithful)
        diff = jnp.concatenate(
            [x - x[i:i + 1, :] for i in range(B)], axis=0)            # (B*B, D)
        nrm = jnp.sqrt(jnp.sum(diff * diff, axis=1, keepdims=True))   # (B*B, 1)
        u = diff * (1.0 / jnp.maximum(nrm, _NORM_EPS))                # F.normalize
        return lax.dot_general(u, u, (((1,), (1,)), ((), ())),
                               preferred_element_type=jnp.float32)    # (B^2, B^2)

    sl1 = _smooth_l1(angle_gram(s), angle_gram(t))
    loss_a = _sum_all(jnp.where(blk, sl1, 0.0)) / float(B * B * B)

    out_ref[...] = w_d * loss_d + w_a * loss_a                        # (1, 1)


# -------------------------------- wrapper ------------------------------------

def rkd_loss(f_s, f_t, w_d=25.0, w_a=50.0):
    """Pallas TPU forward of RKDLoss. f_s, f_t: (B, ...) feature tensors."""
    B = f_s.shape[0]
    s = f_s.reshape(B, -1).astype(jnp.float32)
    t = f_t.reshape(B, -1).astype(jnp.float32)
    out = pl.pallas_call(
        functools.partial(_rkd_loss_kernel, w_d=float(w_d), w_a=float(w_a)),
        out_shape=jax.ShapeDtypeStruct((1, 1), jnp.float32),
        in_specs=[pl.BlockSpec(memory_space=pltpu.MemorySpace.VMEM)] * 2,
        out_specs=pl.BlockSpec(memory_space=pltpu.MemorySpace.VMEM),
    )(s, t)
    return out[0, 0]


# ------------------------- pure-JAX reference --------------------------------

def _pdist_ref(e, eps=1e-12):
    e_sq = jnp.sum(e * e, axis=1)
    prod = e @ e.T
    res = jnp.sqrt(jnp.maximum(e_sq[:, None] + e_sq[None, :] - 2.0 * prod, eps))
    return res * (1.0 - jnp.eye(e.shape[0], dtype=res.dtype))


def rkd_loss_ref(f_s, f_t, w_d=25.0, w_a=50.0):
    B = f_s.shape[0]
    s = f_s.reshape(B, -1).astype(jnp.float32)
    t = f_t.reshape(B, -1).astype(jnp.float32)

    t_d = _pdist_ref(t)
    t_d = t_d / (jnp.sum(jnp.where(t_d > 0, t_d, 0.0)) /
                 jnp.sum((t_d > 0).astype(jnp.float32)))
    d = _pdist_ref(s)
    d = d / (jnp.sum(jnp.where(d > 0, d, 0.0)) /
             jnp.sum((d > 0).astype(jnp.float32)))
    loss_d = jnp.mean(_smooth_l1(d, t_d))

    def angles(e):
        diff = e[None, :, :] - e[:, None, :]                  # (B, B, D)
        nrm = jnp.sqrt(jnp.sum(diff * diff, axis=2, keepdims=True))
        u = diff / jnp.maximum(nrm, 1e-12)
        return jnp.einsum("ijd,ikd->ijk", u, u)

    loss_a = jnp.mean(_smooth_l1(angles(s), angles(t)))
    return w_d * loss_d + w_a * loss_a


# ---------------------------------- main --------------------------------------

if __name__ == "__main__":
    key = jax.random.PRNGKey(0)
    ks, kt = jax.random.split(key)
    B, C, H, W = 8, 4, 4, 4          # features flatten to (8, 64)
    f_s = jax.random.normal(ks, (B, C, H, W), jnp.float32)
    f_t = jax.random.normal(kt, (B, C, H, W), jnp.float32)

    out = jax.block_until_ready(rkd_loss(f_s, f_t))
    ref = jax.block_until_ready(rkd_loss_ref(f_s, f_t))

    err = float(jnp.abs(out - ref))
    if not np.allclose(np.asarray(out), np.asarray(ref), rtol=2e-3, atol=1e-3):
        raise AssertionError(
            f"mismatch vs reference: kernel={float(out)} ref={float(ref)} |err|={err}")
    print("KERNEL_OK")
</pallas_src>

<mosaic_0001>
module attributes {stable_mosaic.version = 11 : i64} {
  func.func @_rkd_loss_kernel(%arg0: memref<8x64xf32, #tpu.memory_space<vmem>>, %arg1: memref<8x64xf32, #tpu.memory_space<vmem>>, %arg2: memref<1x1xf32, #tpu.memory_space<vmem>>) attributes {dimension_semantics = [], scalar_prefetch = 0 : i64, scratch_operands = 0 : i64, tpu.core_type = #tpu.core_type<tc>} {
    %c0 = arith.constant 0 : index
    %c0_0 = arith.constant 0 : index
    %0 = vector.load %arg0[%c0, %c0_0] : memref<8x64xf32, #tpu.memory_space<vmem>>, vector<8x64xf32>
    %c0_1 = arith.constant 0 : index
    %c0_2 = arith.constant 0 : index
    %1 = vector.load %arg1[%c0_1, %c0_2] : memref<8x64xf32, #tpu.memory_space<vmem>>, vector<8x64xf32>
    %2 = tpu.iota {dimensions = array<i32: 0>} : vector<8x8xi32>
    %3 = tpu.iota {dimensions = array<i32: 1>} : vector<8x8xi32>
    %4 = arith.cmpi eq, %2, %3 : vector<8x8xi32>
    %5 = tpu.iota {dimensions = array<i32: 0>} : vector<64x64xi32>
    %6 = tpu.iota {dimensions = array<i32: 1>} : vector<64x64xi32>
    %c3_i32 = arith.constant 3 : i32
    %7 = vector.broadcast %c3_i32 : i32 to vector<64x64xi32>
    %8 = arith.shrsi %5, %7 : vector<64x64xi32>
    %c3_i32_3 = arith.constant 3 : i32
    %9 = vector.broadcast %c3_i32_3 : i32 to vector<64x64xi32>
    %10 = arith.shrsi %6, %9 : vector<64x64xi32>
    %11 = arith.cmpi eq, %8, %10 : vector<64x64xi32>
    %cst = arith.constant dense<0.000000e+00> : vector<8x8xf32>
    %12 = tpu.matmul %0, %0, %cst {dimension_numbers = #tpu.dot_dimension_numbers<[1], [1], [0], [0], [0, 0, 1, 0], [], []>} : vector<8x64xf32>, vector<8x64xf32>, vector<8x8xf32> -> vector<8x8xf32>
    %cst_4 = arith.constant 0.000000e+00 : f32
    %13 = vector.broadcast %cst_4 : f32 to vector<8x8xf32>
    %14 = arith.select %4, %12, %13 : vector<8x8xi1>, vector<8x8xf32>
    %cst_5 = arith.constant dense<0.000000e+00> : vector<8xf32>
    %15 = vector.multi_reduction <add>, %14, %cst_5 [1] : vector<8x8xf32> to vector<8xf32>
    %16 = vector.shape_cast %15 : vector<8xf32> to vector<8x1xf32>
    %cst_6 = arith.constant dense<0.000000e+00> : vector<8xf32>
    %17 = vector.multi_reduction <add>, %14, %cst_6 [0] : vector<8x8xf32> to vector<8xf32>
    %18 = vector.shape_cast %17 : vector<8xf32> to vector<1x8xf32>
    %19 = vector.broadcast %16 : vector<8x1xf32> to vector<8x8xf32>
    %20 = vector.broadcast %18 : vector<1x8xf32> to vector<8x8xf32>
    %21 = arith.addf %19, %20 : vector<8x8xf32>
    %cst_7 = arith.constant 2.000000e+00 : f32
    %22 = vector.broadcast %cst_7 : f32 to vector<8x8xf32>
    %23 = arith.mulf %22, %12 : vector<8x8xf32>
    %24 = arith.subf %21, %23 : vector<8x8xf32>
    %cst_8 = arith.constant 9.99999996E-13 : f32
    %25 = vector.broadcast %cst_8 : f32 to vector<8x8xf32>
    %26 = arith.maximumf %24, %25 : vector<8x8xf32>
    %27 = math.sqrt %26 : vector<8x8xf32>
    %cst_9 = arith.constant 0.000000e+00 : f32
    %28 = vector.broadcast %cst_9 : f32 to vector<8x8xf32>
    %29 = arith.select %4, %28, %27 : vector<8x8xi1>, vector<8x8xf32>
    %cst_10 = arith.constant 0.000000e+00 : f32
    %30 = vector.broadcast %cst_10 : f32 to vector<8x8xf32>
    %31 = arith.cmpf ogt, %29, %30 : vector<8x8xf32>
    %cst_11 = arith.constant 0.000000e+00 : f32
    %32 = vector.broadcast %cst_11 : f32 to vector<8x8xf32>
    %33 = arith.select %31, %29, %32 : vector<8x8xi1>, vector<8x8xf32>
    %cst_12 = arith.constant dense<0.000000e+00> : vector<8xf32>
    %34 = vector.multi_reduction <add>, %33, %cst_12 [1] : vector<8x8xf32> to vector<8xf32>
    %35 = vector.shape_cast %34 : vector<8xf32> to vector<8x1xf32>
    %cst_13 = arith.constant dense<0.000000e+00> : vector<1xf32>
    %36 = vector.multi_reduction <add>, %35, %cst_13 [0] : vector<8x1xf32> to vector<1xf32>
    %37 = vector.shape_cast %36 : vector<1xf32> to vector<1x1xf32>
    %cst_14 = arith.constant 1.000000e+00 : f32
    %cst_15 = arith.constant 0.000000e+00 : f32
    %38 = vector.broadcast %cst_14 : f32 to vector<8x8xf32>
    %39 = vector.broadcast %cst_15 : f32 to vector<8x8xf32>
    %40 = arith.select %31, %38, %39 : vector<8x8xi1>, vector<8x8xf32>
    %cst_16 = arith.constant dense<0.000000e+00> : vector<8xf32>
    %41 = vector.multi_reduction <add>, %40, %cst_16 [1] : vector<8x8xf32> to vector<8xf32>
    %42 = vector.shape_cast %41 : vector<8xf32> to vector<8x1xf32>
    %cst_17 = arith.constant dense<0.000000e+00> : vector<1xf32>
    %43 = vector.multi_reduction <add>, %42, %cst_17 [0] : vector<8x1xf32> to vector<1xf32>
    %44 = vector.shape_cast %43 : vector<1xf32> to vector<1x1xf32>
    %45 = arith.divf %37, %44 : vector<1x1xf32>
    %46 = vector.broadcast %45 : vector<1x1xf32> to vector<8x8xf32>
    %47 = arith.divf %29, %46 : vector<8x8xf32>
    %cst_18 = arith.constant dense<0.000000e+00> : vector<8x8xf32>
    %48 = tpu.matmul %1, %1, %cst_18 {dimension_numbers = #tpu.dot_dimension_numbers<[1], [1], [0], [0], [0, 0, 1, 0], [], []>} : vector<8x64xf32>, vector<8x64xf32>, vector<8x8xf32> -> vector<8x8xf32>
    %cst_19 = arith.constant 0.000000e+00 : f32
    %49 = vector.broadcast %cst_19 : f32 to vector<8x8xf32>
    %50 = arith.select %4, %48, %49 : vector<8x8xi1>, vector<8x8xf32>
    %cst_20 = arith.constant dense<0.000000e+00> : vector<8xf32>
    %51 = vector.multi_reduction <add>, %50, %cst_20 [1] : vector<8x8xf32> to vector<8xf32>
    %52 = vector.shape_cast %51 : vector<8xf32> to vector<8x1xf32>
    %cst_21 = arith.constant dense<0.000000e+00> : vector<8xf32>
    %53 = vector.multi_reduction <add>, %50, %cst_21 [0] : vector<8x8xf32> to vector<8xf32>
    %54 = vector.shape_cast %53 : vector<8xf32> to vector<1x8xf32>
    %55 = vector.broadcast %52 : vector<8x1xf32> to vector<8x8xf32>
    %56 = vector.broadcast %54 : vector<1x8xf32> to vector<8x8xf32>
    %57 = arith.addf %55, %56 : vector<8x8xf32>
    %cst_22 = arith.constant 2.000000e+00 : f32
    %58 = vector.broadcast %cst_22 : f32 to vector<8x8xf32>
    %59 = arith.mulf %58, %48 : vector<8x8xf32>
    %60 = arith.subf %57, %59 : vector<8x8xf32>
    %cst_23 = arith.constant 9.99999996E-13 : f32
    %61 = vector.broadcast %cst_23 : f32 to vector<8x8xf32>
    %62 = arith.maximumf %60, %61 : vector<8x8xf32>
    %63 = math.sqrt %62 : vector<8x8xf32>
    %cst_24 = arith.constant 0.000000e+00 : f32
    %64 = vector.broadcast %cst_24 : f32 to vector<8x8xf32>
    %65 = arith.select %4, %64, %63 : vector<8x8xi1>, vector<8x8xf32>
    %cst_25 = arith.constant 0.000000e+00 : f32
    %66 = vector.broadcast %cst_25 : f32 to vector<8x8xf32>
    %67 = arith.cmpf ogt, %65, %66 : vector<8x8xf32>
    %cst_26 = arith.constant 0.000000e+00 : f32
    %68 = vector.broadcast %cst_26 : f32 to vector<8x8xf32>
    %69 = arith.select %67, %65, %68 : vector<8x8xi1>, vector<8x8xf32>
    %cst_27 = arith.constant dense<0.000000e+00> : vector<8xf32>
    %70 = vector.multi_reduction <add>, %69, %cst_27 [1] : vector<8x8xf32> to vector<8xf32>
    %71 = vector.shape_cast %70 : vector<8xf32> to vector<8x1xf32>
    %cst_28 = arith.constant dense<0.000000e+00> : vector<1xf32>
    %72 = vector.multi_reduction <add>, %71, %cst_28 [0] : vector<8x1xf32> to vector<1xf32>
    %73 = vector.shape_cast %72 : vector<1xf32> to vector<1x1xf32>
    %cst_29 = arith.constant 1.000000e+00 : f32
    %cst_30 = arith.constant 0.000000e+00 : f32
    %74 = vector.broadcast %cst_29 : f32 to vector<8x8xf32>
    %75 = vector.broadcast %cst_30 : f32 to vector<8x8xf32>
    %76 = arith.select %67, %74, %75 : vector<8x8xi1>, vector<8x8xf32>
    %cst_31 = arith.constant dense<0.000000e+00> : vector<8xf32>
    %77 = vector.multi_reduction <add>, %76, %cst_31 [1] : vector<8x8xf32> to vector<8xf32>
    %78 = vector.shape_cast %77 : vector<8xf32> to vector<8x1xf32>
    %cst_32 = arith.constant dense<0.000000e+00> : vector<1xf32>
    %79 = vector.multi_reduction <add>, %78, %cst_32 [0] : vector<8x1xf32> to vector<1xf32>
    %80 = vector.shape_cast %79 : vector<1xf32> to vector<1x1xf32>
    %81 = arith.divf %73, %80 : vector<1x1xf32>
    %82 = vector.broadcast %81 : vector<1x1xf32> to vector<8x8xf32>
    %83 = arith.divf %65, %82 : vector<8x8xf32>
    %84 = arith.subf %47, %83 : vector<8x8xf32>
    %85 = math.absf %84 : vector<8x8xf32>
    %cst_33 = arith.constant 1.000000e+00 : f32
    %86 = vector.broadcast %cst_33 : f32 to vector<8x8xf32>
    %87 = arith.cmpf olt, %85, %86 : vector<8x8xf32>
    %cst_34 = arith.constant 5.000000e-01 : f32
    %88 = vector.broadcast %cst_34 : f32 to vector<8x8xf32>
    %89 = arith.mulf %88, %85 : vector<8x8xf32>
    %90 = arith.mulf %89, %85 : vector<8x8xf32>
    %cst_35 = arith.constant 5.000000e-01 : f32
    %91 = vector.broadcast %cst_35 : f32 to vector<8x8xf32>
    %92 = arith.subf %85, %91 : vector<8x8xf32>
    %93 = arith.select %87, %90, %92 : vector<8x8xi1>, vector<8x8xf32>
    %cst_36 = arith.constant dense<0.000000e+00> : vector<8xf32>
    %94 = vector.multi_reduction <add>, %93, %cst_36 [1] : vector<8x8xf32> to vector<8xf32>
    %95 = vector.shape_cast %94 : vector<8xf32> to vector<8x1xf32>
    %cst_37 = arith.constant dense<0.000000e+00> : vector<1xf32>
    %96 = vector.multi_reduction <add>, %95, %cst_37 [0] : vector<8x1xf32> to vector<1xf32>
    %97 = vector.shape_cast %96 : vector<1xf32> to vector<1x1xf32>
    %cst_38 = arith.constant 6.400000e+01 : f32
    %98 = vector.broadcast %cst_38 : f32 to vector<1x1xf32>
    %99 = arith.divf %97, %98 : vector<1x1xf32>
    %100 = vector.extract_strided_slice %0 {offsets = [0, 0], sizes = [1, 64], strides = [1, 1]} : vector<8x64xf32> to vector<1x64xf32>
    %101 = vector.broadcast %100 : vector<1x64xf32> to vector<8x64xf32>
    %102 = arith.subf %0, %101 : vector<8x64xf32>
    %103 = vector.extract_strided_slice %0 {offsets = [1, 0], sizes = [1, 64], strides = [1, 1]} : vector<8x64xf32> to vector<1x64xf32>
    %104 = vector.broadcast %103 : vector<1x64xf32> to vector<8x64xf32>
    %105 = arith.subf %0, %104 : vector<8x64xf32>
    %106 = vector.extract_strided_slice %0 {offsets = [2, 0], sizes = [1, 64], strides = [1, 1]} : vector<8x64xf32> to vector<1x64xf32>
    %107 = vector.broadcast %106 : vector<1x64xf32> to vector<8x64xf32>
    %108 = arith.subf %0, %107 : vector<8x64xf32>
    %109 = vector.extract_strided_slice %0 {offsets = [3, 0], sizes = [1, 64], strides = [1, 1]} : vector<8x64xf32> to vector<1x64xf32>
    %110 = vector.broadcast %109 : vector<1x64xf32> to vector<8x64xf32>
    %111 = arith.subf %0, %110 : vector<8x64xf32>
    %112 = vector.extract_strided_slice %0 {offsets = [4, 0], sizes = [1, 64], strides = [1, 1]} : vector<8x64xf32> to vector<1x64xf32>
    %113 = vector.broadcast %112 : vector<1x64xf32> to vector<8x64xf32>
    %114 = arith.subf %0, %113 : vector<8x64xf32>
    %115 = vector.extract_strided_slice %0 {offsets = [5, 0], sizes = [1, 64], strides = [1, 1]} : vector<8x64xf32> to vector<1x64xf32>
    %116 = vector.broadcast %115 : vector<1x64xf32> to vector<8x64xf32>
    %117 = arith.subf %0, %116 : vector<8x64xf32>
    %118 = vector.extract_strided_slice %0 {offsets = [6, 0], sizes = [1, 64], strides = [1, 1]} : vector<8x64xf32> to vector<1x64xf32>
    %119 = vector.broadcast %118 : vector<1x64xf32> to vector<8x64xf32>
    %120 = arith.subf %0, %119 : vector<8x64xf32>
    %121 = vector.extract_strided_slice %0 {offsets = [7, 0], sizes = [1, 64], strides = [1, 1]} : vector<8x64xf32> to vector<1x64xf32>
    %122 = vector.broadcast %121 : vector<1x64xf32> to vector<8x64xf32>
    %123 = arith.subf %0, %122 : vector<8x64xf32>
    %124 = tpu.concatenate %102, %105, %108, %111, %114, %117, %120, %123 in 0 : vector<8x64xf32>, vector<8x64xf32>, vector<8x64xf32>, vector<8x64xf32>, vector<8x64xf32>, vector<8x64xf32>, vector<8x64xf32>, vector<8x64xf32> -> vector<64x64xf32>
    %125 = arith.mulf %124, %124 : vector<64x64xf32>
    %cst_39 = arith.constant dense<0.000000e+00> : vector<64xf32>
    %126 = vector.multi_reduction <add>, %125, %cst_39 [1] : vector<64x64xf32> to vector<64xf32>
    %127 = vector.shape_cast %126 : vector<64xf32> to vector<64x1xf32>
    %128 = math.sqrt %127 : vector<64x1xf32>
    %cst_40 = arith.constant 9.99999996E-13 : f32
    %129 = vector.broadcast %cst_40 : f32 to vector<64x1xf32>
    %130 = arith.maximumf %128, %129 : vector<64x1xf32>
    %cst_41 = arith.constant 1.000000e+00 : f32
    %131 = vector.broadcast %cst_41 : f32 to vector<64x1xf32>
    %132 = arith.divf %131, %130 : vector<64x1xf32>
    %133 = vector.broadcast %132 : vector<64x1xf32> to vector<64x64xf32>
    %134 = arith.mulf %124, %133 : vector<64x64xf32>
    %cst_42 = arith.constant dense<0.000000e+00> : vector<64x64xf32>
    %135 = tpu.matmul %134, %134, %cst_42 {dimension_numbers = #tpu.dot_dimension_numbers<[1], [1], [0], [0], [0, 0, 1, 0], [], []>} : vector<64x64xf32>, vector<64x64xf32>, vector<64x64xf32> -> vector<64x64xf32>
    %136 = vector.extract_strided_slice %1 {offsets = [0, 0], sizes = [1, 64], strides = [1, 1]} : vector<8x64xf32> to vector<1x64xf32>
    %137 = vector.broadcast %136 : vector<1x64xf32> to vector<8x64xf32>
    %138 = arith.subf %1, %137 : vector<8x64xf32>
    %139 = vector.extract_strided_slice %1 {offsets = [1, 0], sizes = [1, 64], strides = [1, 1]} : vector<8x64xf32> to vector<1x64xf32>
    %140 = vector.broadcast %139 : vector<1x64xf32> to vector<8x64xf32>
    %141 = arith.subf %1, %140 : vector<8x64xf32>
    %142 = vector.extract_strided_slice %1 {offsets = [2, 0], sizes = [1, 64], strides = [1, 1]} : vector<8x64xf32> to vector<1x64xf32>
    %143 = vector.broadcast %142 : vector<1x64xf32> to vector<8x64xf32>
    %144 = arith.subf %1, %143 : vector<8x64xf32>
    %145 = vector.extract_strided_slice %1 {offsets = [3, 0], sizes = [1, 64], strides = [1, 1]} : vector<8x64xf32> to vector<1x64xf32>
    %146 = vector.broadcast %145 : vector<1x64xf32> to vector<8x64xf32>
    %147 = arith.subf %1, %146 : vector<8x64xf32>
    %148 = vector.extract_strided_slice %1 {offsets = [4, 0], sizes = [1, 64], strides = [1, 1]} : vector<8x64xf32> to vector<1x64xf32>
    %149 = vector.broadcast %148 : vector<1x64xf32> to vector<8x64xf32>
    %150 = arith.subf %1, %149 : vector<8x64xf32>
    %151 = vector.extract_strided_slice %1 {offsets = [5, 0], sizes = [1, 64], strides = [1, 1]} : vector<8x64xf32> to vector<1x64xf32>
    %152 = vector.broadcast %151 : vector<1x64xf32> to vector<8x64xf32>
    %153 = arith.subf %1, %152 : vector<8x64xf32>
    %154 = vector.extract_strided_slice %1 {offsets = [6, 0], sizes = [1, 64], strides = [1, 1]} : vector<8x64xf32> to vector<1x64xf32>
    %155 = vector.broadcast %154 : vector<1x64xf32> to vector<8x64xf32>
    %156 = arith.subf %1, %155 : vector<8x64xf32>
    %157 = vector.extract_strided_slice %1 {offsets = [7, 0], sizes = [1, 64], strides = [1, 1]} : vector<8x64xf32> to vector<1x64xf32>
    %158 = vector.broadcast %157 : vector<1x64xf32> to vector<8x64xf32>
    %159 = arith.subf %1, %158 : vector<8x64xf32>
    %160 = tpu.concatenate %138, %141, %144, %147, %150, %153, %156, %159 in 0 : vector<8x64xf32>, vector<8x64xf32>, vector<8x64xf32>, vector<8x64xf32>, vector<8x64xf32>, vector<8x64xf32>, vector<8x64xf32>, vector<8x64xf32> -> vector<64x64xf32>
    %161 = arith.mulf %160, %160 : vector<64x64xf32>
    %cst_43 = arith.constant dense<0.000000e+00> : vector<64xf32>
    %162 = vector.multi_reduction <add>, %161, %cst_43 [1] : vector<64x64xf32> to vector<64xf32>
    %163 = vector.shape_cast %162 : vector<64xf32> to vector<64x1xf32>
    %164 = math.sqrt %163 : vector<64x1xf32>
    %cst_44 = arith.constant 9.99999996E-13 : f32
    %165 = vector.broadcast %cst_44 : f32 to vector<64x1xf32>
    %166 = arith.maximumf %164, %165 : vector<64x1xf32>
    %cst_45 = arith.constant 1.000000e+00 : f32
    %167 = vector.broadcast %cst_45 : f32 to vector<64x1xf32>
    %168 = arith.divf %167, %166 : vector<64x1xf32>
    %169 = vector.broadcast %168 : vector<64x1xf32> to vector<64x64xf32>
    %170 = arith.mulf %160, %169 : vector<64x64xf32>
    %cst_46 = arith.constant dense<0.000000e+00> : vector<64x64xf32>
    %171 = tpu.matmul %170, %170, %cst_46 {dimension_numbers = #tpu.dot_dimension_numbers<[1], [1], [0], [0], [0, 0, 1, 0], [], []>} : vector<64x64xf32>, vector<64x64xf32>, vector<64x64xf32> -> vector<64x64xf32>
    %172 = arith.subf %135, %171 : vector<64x64xf32>
    %173 = math.absf %172 : vector<64x64xf32>
    %cst_47 = arith.constant 1.000000e+00 : f32
    %174 = vector.broadcast %cst_47 : f32 to vector<64x64xf32>
    %175 = arith.cmpf olt, %173, %174 : vector<64x64xf32>
    %cst_48 = arith.constant 5.000000e-01 : f32
    %176 = vector.broadcast %cst_48 : f32 to vector<64x64xf32>
    %177 = arith.mulf %176, %173 : vector<64x64xf32>
    %178 = arith.mulf %177, %173 : vector<64x64xf32>
    %cst_49 = arith.constant 5.000000e-01 : f32
    %179 = vector.broadcast %cst_49 : f32 to vector<64x64xf32>
    %180 = arith.subf %173, %179 : vector<64x64xf32>
    %181 = arith.select %175, %178, %180 : vector<64x64xi1>, vector<64x64xf32>
    %cst_50 = arith.constant 0.000000e+00 : f32
    %182 = vector.broadcast %cst_50 : f32 to vector<64x64xf32>
    %183 = arith.select %11, %181, %182 : vector<64x64xi1>, vector<64x64xf32>
    %cst_51 = arith.constant dense<0.000000e+00> : vector<64xf32>
    %184 = vector.multi_reduction <add>, %183, %cst_51 [1] : vector<64x64xf32> to vector<64xf32>
    %185 = vector.shape_cast %184 : vector<64xf32> to vector<64x1xf32>
    %cst_52 = arith.constant dense<0.000000e+00> : vector<1xf32>
    %186 = vector.multi_reduction <add>, %185, %cst_52 [0] : vector<64x1xf32> to vector<1xf32>
    %187 = vector.shape_cast %186 : vector<1xf32> to vector<1x1xf32>
    %cst_53 = arith.constant 5.120000e+02 : f32
    %188 = vector.broadcast %cst_53 : f32 to vector<1x1xf32>
    %189 = arith.divf %187, %188 : vector<1x1xf32>
    %cst_54 = arith.constant 2.500000e+01 : f32
    %190 = vector.broadcast %cst_54 : f32 to vector<1x1xf32>
    %191 = arith.mulf %190, %99 : vector<1x1xf32>
    %cst_55 = arith.constant 5.000000e+01 : f32
    %192 = vector.broadcast %cst_55 : f32 to vector<1x1xf32>
    %193 = arith.mulf %192, %189 : vector<1x1xf32>
    %194 = arith.addf %191, %193 : vector<1x1xf32>
    %c0_56 = arith.constant 0 : index
    %c0_57 = arith.constant 0 : index
    %195 = vector.load %arg2[%c0_56, %c0_57] : memref<1x1xf32, #tpu.memory_space<vmem>>, vector<1x1xf32>
    tpu.vector_store %arg2[%c0_56, %c0_57], %194 {strides = array<i32>} : memref<1x1xf32, #tpu.memory_space<vmem>>, vector<1x1xf32>,
    return
  }
}

</mosaic_0001>

<bundles_post_ra>
// kernel: tpu_custom_call.1
= control target key start
LH: loop header
LB: loop body
LE: loop exit
PB: predicated region body
PF: predicated region fallthrough
CT: control target
= control target key end

     0   :  { %7 = vsyncpa [#allocation3], 0  ;;  %s2440_s0 = inlined_call_operand.hbm [shape: f32[8,64], index: 0, kind: input, shape index: {}]   ;;  %s2441_s1 = inlined_call_operand.hbm [shape: f32[8,64], index: 1, kind: input, shape index: {}]   ;;  %s2442_s2 = inlined_call_operand.hbm [shape: f32[1,1], index: 2, kind: output, shape index: {}]  }
   0x1   :  { %8 = vsyncpa [#allocation6], 0 }
   0x2   :  { %9 = vsyncpa [#allocation4], 0  ;;  %s15_s11 = sshll.u32 %s2440_s0, 4  ;;  %s1346_s12 = smov [#allocation2]   ;;  %s16_s11 = int_to_ptr.hbm [resolvable:$true] %s15_s11 }
   0x3   :  { %s17_s13 = sshll.u32 %s1346_s12, 4  ;;  %s26_s16 = sshll.u32 %s2441_s1, 4  ;;  %s18_s13 = int_to_ptr.vmem [resolvable:$true] %s17_s13  ;;  %s27_s16 = int_to_ptr.hbm [resolvable:$true] %s26_s16 }
   0x4   :  { %20 = dma.hbm_to_vmem [thread:$0]  %s16_s11, 128, %s18_s13, [#allocation3]  }
   0x5   :  { %s1347_s17 = smov [#allocation5]  }
   0x6   :  { %s28_s18 = sshll.u32 %s1347_s17, 4  ;;  %s29_s18 = int_to_ptr.vmem [resolvable:$true] %s28_s18 }
   0x7   :  { %31 = dma.hbm_to_vmem [thread:$0]  %s27_s16, 128, %s29_s18, [#allocation6]  }
   0x8   :  { %1340 = dma.done.wait [#allocation3], 128  }
   0x9   :  { %1341 = vsyncadd [#allocation3], 4294967168 }
   0xa   :  { %1342 = dma.done.wait [#allocation6], 128  }
   0xb   :  { %1343 = vsyncadd [#allocation6], 4294967168  ;;  %vm71_vm0 = vcmask 523264   ;;  %v1373_v0 = vld [vmem:[#allocation2] sm:$0xff]  ;;  %v1375_v1 = vld [vmem:[#allocation5] sm:$0xff]  ;;  %vm96_vm2 = vcmask 64512  }
   0xc   :  { %1121 = vmatpush.xpose.msk.msra.mxu0 %vm71_vm0, %v1373_v0  ;;  %1123 = vmatpush.xpose.msk.msra.mxu1 %vm71_vm0, %v1375_v1  ;;  %v658_v2 = vperm.slane %v1375_v1, 7  ;;  %v313_v3 = vperm.slane %v1373_v0, 7  ;;  %v311_v4 = vperm.slane %v1373_v0, 6  ;;  %v656_v5 = vperm.slane %v1375_v1, 6  ;;  %s1351_s0 = smov [#allocation7]   ;;  %s1110_s21 = sshll.u32 %s2442_s2, 4  ;;  %s1111_s21 = int_to_ptr.hbm [resolvable:$true] %s1110_s21 }
   0xd   :  { %v654_v6 = vperm.slane %v1375_v1, 5  ;;  %v652_v7 = vperm.slane %v1375_v1, 4  ;;  %v650_v22 = vperm.slane %v1375_v1, 3  ;;  %v309_v23 = vperm.slane %v1373_v0, 5  ;;  %s1108_s1 = sshll.u32 %s1351_s0, 4  ;;  %s1109_s1 = int_to_ptr.vmem [resolvable:$true] %s1108_s1 }
   0xe   :  { %v1388_v8 = vsub.f32 %v1375_v1, %v658_v2  ;;  %v1391_v9 = vsub.f32 %v1373_v0, %v313_v3  ;;  %v1394_v10 = vsub.f32 %v1373_v0, %v311_v4  ;;  %v1401_v11 = vsub.f32 %v1375_v1, %v656_v5 }
   0xf   :  { %1122 = vmatmul.msk.f32.vlgmr.msra.gmra.mxu0 %vm71_vm0, %v1373_v0  ;;  %1124 = vmatmul.msk.f32.vlgmr.msra.gmra.mxu1 %vm71_vm0, %v1375_v1  ;;  %v1410_v15 = vsub.f32 %v1375_v1, %v654_v6  ;;  %v1413_v16 = vsub.f32 %v1375_v1, %v652_v7  ;;  %v307_v25 = vperm.slane %v1373_v0, 4  ;;  %v1430_v28 = vsub.f32 %v1375_v1, %v650_v22 }
  0x10   :  { %v667_v12 = vmul.f32 %v1388_v8, %v1388_v8  ;;  %v322_v13 = vmul.f32 %v1391_v9, %v1391_v9  ;;  %v321_v14 = vmul.f32 %v1394_v10, %v1394_v10  ;;  %v666_v20 = vmul.f32 %v1401_v11, %v1401_v11 }
  0x11   :  { %v665_v21 = vmul.f32 %v1410_v15, %v1410_v15  ;;  %v664_v24 = vmul.f32 %v1413_v16, %v1413_v16  ;;  %v1433_v29 = vsub.f32 %v1373_v0, %v309_v23  ;;  %v1437_v31 = vsub.f32 %v1373_v0, %v307_v25 }
  0x12   :  { %v689_v17 = vsel %vm71_vm0, %v667_v12, 0.0  ;;  %v344_v18 = vsel %vm71_vm0, %v322_v13, 0.0  ;;  %v341_v19 = vsel %vm71_vm0, %v321_v14, 0.0  ;;  %v686_v26 = vsel %vm71_vm0, %v666_v20, 0.0 }
  0x13   :  { %690 = vadd.xlane.f32.xlu0 %v689_v17  ;;  %345 = vadd.xlane.f32.xlu1 %v344_v18  ;;  %v683_v27 = vsel %vm71_vm0, %v665_v21, 0.0  ;;  %v680_v30 = vsel %vm71_vm0, %v664_v24, 0.0  ;;  %v663_v32 = vmul.f32 %v1430_v28, %v1430_v28  ;;  %v320_v33 = vmul.f32 %v1433_v29, %v1433_v29 }
  0x14   :  { %342 = vadd.xlane.f32.xlu2 %v341_v19  ;;  %v648_v34 = vperm.slane %v1375_v1, 2  ;;  %v305_v35 = vperm.slane %v1373_v0, 3  ;;  %v319_v36 = vmul.f32 %v1437_v31, %v1437_v31  ;;  %v646_v37 = vperm.slane %v1375_v1, 1 }
  0x15   :  { %v677_v38 = vsel %vm71_vm0, %v663_v32, 0.0  ;;  %v338_v39 = vsel %vm71_vm0, %v320_v33, 0.0  ;;  %v644_v46 = vperm.slane %v1375_v1, 0  ;;  %v303_v47 = vperm.slane %v1373_v0, 2 }
  0x16   :  { %v1451_v40 = vsub.f32 %v1375_v1, %v648_v34  ;;  %v1454_v41 = vsub.f32 %v1373_v0, %v305_v35  ;;  %v335_v42 = vsel %vm71_vm0, %v319_v36, 0.0  ;;  %v1458_v43 = vsub.f32 %v1375_v1, %v646_v37 }
  0x17   :  { %v301_v49 = vperm.slane %v1373_v0, 1  ;;  %v1472_v52 = vsub.f32 %v1375_v1, %v644_v46  ;;  %v1475_v53 = vsub.f32 %v1373_v0, %v303_v47  ;;  %v299_v58 = vperm.slane %v1373_v0, 0 }
  0x18   :  { %v662_v44 = vmul.f32 %v1451_v40, %v1451_v40  ;;  %v318_v45 = vmul.f32 %v1454_v41, %v1454_v41  ;;  %v661_v48 = vmul.f32 %v1458_v43, %v1458_v43  ;;  %v42_v3 = vlaneseq }
  0x19   :  { %v1479_v55 = vsub.f32 %v1373_v0, %v301_v49  ;;  %v660_v56 = vmul.f32 %v1472_v52, %v1472_v52  ;;  %v317_v57 = vmul.f32 %v1475_v53, %v1475_v53  ;;  %v1491_v62 = vsub.f32 %v1373_v0, %v299_v58 }
  0x1a   :  { %v674_v50 = vsel %vm71_vm0, %v662_v44, 0.0  ;;  %v332_v51 = vsel %vm71_vm0, %v318_v45, 0.0  ;;  %v671_v54 = vsel %vm71_vm0, %v661_v48, 0.0  ;;  %v1501_v6 = vshrl.u32 %v42_v3, 7 }
  0x1b   :  { %687 = vadd.xlane.f32.xlu0 %v686_v26  ;;  %684 = vadd.xlane.f32.xlu1 %v683_v27  ;;  %v316_v59 = vmul.f32 %v1479_v55, %v1479_v55  ;;  %v668_v60 = vsel %vm71_vm0, %v660_v56, 0.0  ;;  %v329_v61 = vsel %vm71_vm0, %v317_v57, 0.0  ;;  %2450 = vst [vmem:[#allocation11_spill] sm:$0xff] %v1491_v62  ;;  %v315_v1 = vmul.f32 %v1491_v62, %v1491_v62 }
  0x1c   :  { %681 = vadd.xlane.f32.xlu2 %v680_v30  ;;  %2451 = vst [vmem:[#allocation12_spill] sm:$0xff] %v1501_v6  ;;  %v1503_v0 = vand.u32 127, %v42_v3 }
  0x1d   :  { %v326_v63 = vsel %vm71_vm0, %v316_v59, 0.0  ;;  %v323_v2 = vsel %vm71_vm0, %v315_v1, 0.0 }
  0x1e   :  { %2452 = vst [vmem:[#allocation13_spill] sm:$0xff] %v1503_v0  ;;  %vm46_vm1 = vcmp.eq.s32.totalorder %v1501_v6, %v1503_v0 }
  0x23   :  { %678 = vadd.xlane.f32.xlu1 %v677_v38  ;;  %339 = vadd.xlane.f32.xlu0 %v338_v39 }
  0x24   :  { %336 = vadd.xlane.f32.xlu2 %v335_v42 }
  0x2b   :  { %675 = vadd.xlane.f32.xlu0 %v674_v50  ;;  %333 = vadd.xlane.f32.xlu1 %v332_v51 }
  0x2c   :  { %672 = vadd.xlane.f32.xlu2 %v671_v54 }
  0x33   :  { %669 = vadd.xlane.f32.xlu1 %v668_v60  ;;  %330 = vadd.xlane.f32.xlu0 %v329_v61 }
  0x34   :  { %327 = vadd.xlane.f32.xlu2 %v326_v63 }
  0x3b   :  { %324 = vadd.xlane.f32.xlu0 %v323_v2 }
  0x86   :  { %v1497_v4 = vpop.xlane.xlu0 %690  ;;  %v1499_v5 = vpop.xlane.xlu1 %345 }
  0x87   :  { %1188 = vrsqrt.f32 %v1497_v4  ;;  %v1507_v7 = vpop.xlane.xlu2 %342  ;;  %vm783_vm3 = vcmp.eq.f32.partialorder %v1497_v4, inf  ;;  %vm785_vm4 = vcmp.eq.f32.partialorder %v1497_v4, 0.0  ;;  %v786_v36 = vand.u32 2147483648, %v1497_v4 }
  0x88   :  { %1190 = vrsqrt.f32 %v1499_v5  ;;  %vm438_vm5 = vcmp.eq.f32.partialorder %v1499_v5, inf  ;;  %vm440_vm6 = vcmp.eq.f32.partialorder %v1499_v5, 0.0  ;;  %v441_v45 = vand.u32 2147483648, %v1499_v5 }
  0x89   :  { %1192 = vrsqrt.f32 %v1507_v7  ;;  %vm426_vm7 = vcmp.eq.f32.partialorder %v1507_v7, inf  ;;  %vm428_vm8 = vcmp.eq.f32.partialorder %v1507_v7, 0.0  ;;  %v429_v49 = vand.u32 2147483648, %v1507_v7 }
  0x8c   :  { %v1512_v12 = vpop.f32.mrf.mxu0  ;;  %v1514_v13 = vpop.f32.mrf.mxu1 }
  0x8d   :  { %2453 = vst [vmem:[#allocation14_spill] sm:$0xff] %v1512_v12  ;;  %v1189_v14 = vpop.eup %1188  ;;  %v95_v17 = vsel %vm46_vm1, %v1512_v12, 0.0  ;;  %v197_v18 = vsel %vm46_vm1, %v1514_v13, 0.0 }
  0x8e   :  { %2454 = vst [vmem:[#allocation15_spill] sm:$0xff] %v1514_v13  ;;  %v1191_v19 = vpop.eup %1190  ;;  %v777_v20 = vmul.f32 %v1189_v14, %v1497_v4  ;;  %v1525_v21 = vpop.xlane.xlu0 %687  ;;  %v1530_v23 = vsel %vm96_vm2, %v197_v18, 0.0  ;;  %v1533_v24 = vsel %vm96_vm2, %v95_v17, 0.0 }
  0x8f   :  { %v1527_v22 = vpop.xlane.xlu1 %684  ;;  %v1193_v25 = vpop.eup %1192  ;;  %v432_v26 = vmul.f32 %v1191_v19, %v1499_v5  ;;  %1194 = vrsqrt.f32 %v1525_v21  ;;  %199 = vadd.xlane.f32.xlu2 %v1530_v23  ;;  %98 = vadd.xlane.f32.xlu1 %v1533_v24  ;;  %vm771_vm9 = vcmp.eq.f32.partialorder %v1525_v21, inf  ;;  %v774_v57 = vand.u32 2147483648, %v1525_v21 }
  0x90   :  { %v778_v27 = vmul.f32 %v1189_v14, %v777_v20  ;;  %v420_v30 = vmul.f32 %v1193_v25, %v1507_v7  ;;  %1196 = vrsqrt.f32 %v1527_v22  ;;  %v1542_v35 = vpop.xlane.xlu2 %681  ;;  %vm773_vm10 = vcmp.eq.f32.partialorder %v1525_v21, 0.0 }
  0x91   :  { %v433_v32 = vmul.f32 %v1191_v19, %v432_v26  ;;  %1198 = vrsqrt.f32 %v1542_v35  ;;  %vm759_vm11 = vcmp.eq.f32.partialorder %v1527_v22, inf  ;;  %vm761_vm12 = vcmp.eq.f32.partialorder %v1527_v22, 0.0 }
  0x92   :  { %v779_v33 = vmul.f32 0.5, %v778_v27  ;;  %v421_v34 = vmul.f32 %v1193_v25, %v420_v30  ;;  %v201_v3 = vrot.slane %v1530_v23, 4  ;;  %vm747_vm13 = vcmp.eq.f32.partialorder %v1542_v35, inf }
  0x93   :  { %v434_v37 = vmul.f32 0.5, %v433_v32  ;;  %vm749_vm14 = vcmp.eq.f32.partialorder %v1542_v35, 0.0 }
  0x94   :  { %v780_v38 = vsub.f32 1.5, %v779_v33  ;;  %v422_v39 = vmul.f32 0.5, %v421_v34 }
  0x95   :  { %v1195_v42 = vpop.eup %1194  ;;  %v435_v44 = vsub.f32 1.5, %v434_v37 }
  0x96   :  { %v1197_v46 = vpop.eup %1196  ;;  %v781_v47 = vmul.f32 %v1189_v14, %v780_v38  ;;  %v423_v48 = vsub.f32 1.5, %v422_v39  ;;  %v765_v50 = vmul.f32 %v1195_v42, %v1525_v21  ;;  %v1556_v54 = vpop.xlane.xlu0 %339  ;;  %v100_v14 = vrot.slane %v1533_v24, 4 }
  0x97   :  { %v1554_v51 = vpop.xlane.xlu1 %678  ;;  %v436_v56 = vmul.f32 %v1191_v19, %v435_v44  ;;  %v753_v58 = vmul.f32 %v1197_v46, %v1527_v22  ;;  %v1199_v63 = vpop.eup %1198  ;;  %v762_v38 = vand.u32 2147483648, %v1527_v22 }
  0x98   :  { %1200 = vrsqrt.f32 %v1554_v51  ;;  %v782_v59 = vmul.f32 %v781_v47, %v1497_v4  ;;  %v424_v60 = vmul.f32 %v1193_v25, %v423_v48  ;;  %v766_v61 = vmul.f32 %v1195_v42, %v765_v50  ;;  %v1587_v37 = vpop.xlane.xlu2 %336 }
  0x99   :  { %v437_v1 = vmul.f32 %v436_v56, %v1499_v5  ;;  %v754_v2 = vmul.f32 %v1197_v46, %v753_v58  ;;  %v741_v20 = vmul.f32 %v1199_v63, %v1542_v35  ;;  %1202 = vrsqrt.f32 %v1556_v54 }
  0x9a   :  { %v784_v17 = vsel %vm783_vm3, %v1497_v4, %v782_v59  ;;  %v425_v18 = vmul.f32 %v424_v60, %v1507_v7  ;;  %v767_v19 = vmul.f32 0.5, %v766_v61  ;;  %v1592_v47 = vadd.f32 %v201_v3, %v1530_v23 }
  0x9b   :  { %v787_v25 = vsel %vm785_vm4, %v786_v36, %v784_v17  ;;  %v439_v26 = vsel %vm438_vm5, %v1499_v5, %v437_v1  ;;  %v755_v27 = vmul.f32 0.5, %v754_v2  ;;  %v742_v39 = vmul.f32 %v1199_v63, %v741_v20 }
  0x9c   :  { %v1580_v30 = vmax.f32 %v787_v25, 1e-12  ;;  %v442_v32 = vsel %vm440_vm6, %v441_v45, %v439_v26  ;;  %v427_v33 = vsel %vm426_vm7, %v1507_v7, %v425_v18  ;;  %v768_v34 = vsub.f32 1.5, %v767_v19 }
  0x9d   :  { %v756_v36 = vsub.f32 1.5, %v755_v27  ;;  %v1598_v48 = vmax.f32 %v442_v32, 1e-12  ;;  %v430_v50 = vsel %vm428_vm8, %v429_v49, %v427_v33  ;;  %v743_v58 = vmul.f32 0.5, %v742_v39 }
  0x9e   :  { %v1201_v4 = vpop.eup %1200  ;;  %v769_v44 = vmul.f32 %v1195_v42, %v768_v34  ;;  %v1596_v45 = vpop.xlane.xlu0 %675  ;;  %1204 = vrcp.f32 %v1580_v30  ;;  %v1605_v23 = vadd.f32 %v100_v14, %v1533_v24  ;;  %v750_v2 = vand.u32 2147483648, %v1542_v35 }
  0x9f   :  { %v729_v5 = vmul.f32 %v1201_v4, %v1554_v51  ;;  %v757_v56 = vmul.f32 %v1197_v46, %v756_v36  ;;  %v1203_v60 = vpop.eup %1202  ;;  %v744_v1 = vsub.f32 1.5, %v743_v58  ;;  %1206 = vrsqrt.f32 %v1587_v37  ;;  %v1616_v24 = vpop.xlane.xlu1 %333 }
  0xa0   :  { %v770_v42 = vmul.f32 %v769_v44, %v1525_v21  ;;  %v1610_v7 = vmax.f32 %v430_v50, 1e-12  ;;  %v408_v3 = vmul.f32 %v1203_v60, %v1556_v54  ;;  %1208 = vrcp.f32 %v1598_v48 }
  0xa1   :  { %v730_v59 = vmul.f32 %v1201_v4, %v729_v5  ;;  %v758_v61 = vmul.f32 %v757_v56, %v1527_v22  ;;  %v745_v18 = vmul.f32 %v1199_v63, %v744_v1  ;;  %vm735_vm15 = vcmp.eq.f32.partialorder %v1554_v51, inf }
  0xa2   :  { %v772_v46 = vsel %vm771_vm9, %v1525_v21, %v770_v42  ;;  %v409_v26 = vmul.f32 %v1203_v60, %v408_v3  ;;  %1210 = vrsqrt.f32 %v1596_v45  ;;  %vm737_vm3 = vcmp.eq.f32.partialorder %v1554_v51, 0.0 }
  0xa3   :  { %v731_v49 = vmul.f32 0.5, %v730_v59  ;;  %v775_v14 = vsel %vm773_vm10, %v774_v57, %v772_v46  ;;  %v760_v17 = vsel %vm759_vm11, %v1527_v22, %v758_v61  ;;  %v746_v32 = vmul.f32 %v745_v18, %v1542_v35  ;;  %v1637_v22 = vpop.xlane.xlu2 %672 }
  0xa4   :  { %v1624_v19 = vmax.f32 %v775_v14, 1e-12  ;;  %v763_v20 = vsel %vm761_vm12, %v762_v38, %v760_v17  ;;  %v1632_v21 = vpop.eup %1204  ;;  %1212 = vrcp.f32 %v1610_v7  ;;  %v410_v33 = vmul.f32 0.5, %v409_v26 }
  0xa5   :  { %v732_v25 = vsub.f32 1.5, %v731_v49  ;;  %v1635_v57 = vmax.f32 %v763_v20, 1e-12  ;;  %v1207_v34 = vpop.eup %1206  ;;  %v748_v36 = vsel %vm747_vm13, %v1542_v35, %v746_v32  ;;  %v738_v38 = vand.u32 2147483648, %v1554_v51 }
  0xa6   :  { %1214 = vrcp.f32 %v1624_v19  ;;  %v751_v39 = vsel %vm749_vm14, %v750_v2, %v748_v36  ;;  %v396_v5 = vmul.f32 %v1207_v34, %v1587_v37  ;;  %v1649_v50 = vpop.xlane.xlu0 %330  ;;  %v1651_v56 = vpop.eup %1208  ;;  %vm414_vm4 = vcmp.eq.f32.partialorder %v1556_v54, inf }
  0xa7   :  { %v733_v63 = vmul.f32 %v1201_v4, %v732_v25  ;;  %v411_v4 = vsub.f32 1.5, %v410_v33  ;;  %v1654_v42 = vmax.f32 %v751_v39, 1e-12  ;;  %1216 = vrsqrt.f32 %v1616_v24  ;;  %v1673_v18 = vpop.xlane.xlu1 %669 }
  0xa8   :  { %1218 = vrcp.f32 %v1635_v57  ;;  %v397_v61 = vmul.f32 %v1207_v34, %v396_v5  ;;  %v1211_v1 = vpop.eup %1210  ;;  %vm416_vm5 = vcmp.eq.f32.partialorder %v1556_v54, 0.0  ;;  %v417_v46 = vand.u32 2147483648, %v1556_v54 }
  0xa9   :  { %v734_v44 = vmul.f32 %v733_v63, %v1554_v51  ;;  %v412_v59 = vmul.f32 %v1203_v60, %v411_v4  ;;  %1220 = vrcp.f32 %v1654_v42  ;;  %v717_v60 = vmul.f32 %v1211_v1, %v1596_v45 }
  0xaa   :  { %v1667_v49 = vpop.eup %1212  ;;  %v398_v17 = vmul.f32 0.5, %v397_v61  ;;  %vm402_vm6 = vcmp.eq.f32.partialorder %v1587_v37, inf  ;;  %vm404_vm7 = vcmp.eq.f32.partialorder %v1587_v37, 0.0  ;;  %1222 = vrsqrt.f32 %v1637_v22 }
  0xab   :  { %v736_v35 = vsel %vm735_vm15, %v1554_v51, %v734_v44  ;;  %v413_v14 = vmul.f32 %v412_v59, %v1556_v54  ;;  %v405_v51 = vand.u32 2147483648, %v1587_v37  ;;  %v718_v32 = vmul.f32 %v1211_v1, %v717_v60  ;;  %v1695_v5 = vpop.xlane.xlu2 %327 }
  0xac   :  { %v739_v2 = vsel %vm737_vm3, %v738_v38, %v736_v35  ;;  %v1675_v20 = vpop.eup %1214  ;;  %v399_v26 = vsub.f32 1.5, %v398_v17  ;;  %vm723_vm8 = vcmp.eq.f32.partialorder %v1596_v45, inf  ;;  %vm725_vm9 = vcmp.eq.f32.partialorder %v1596_v45, 0.0 }
  0xad   :  { %v1669_v3 = vmax.f32 %v739_v2, 1e-12  ;;  %v415_v25 = vsel %vm414_vm4, %v1556_v54, %v413_v14  ;;  %v1217_v63 = vpop.eup %1216  ;;  %v719_v44 = vmul.f32 0.5, %v718_v32  ;;  %v726_v54 = vand.u32 2147483648, %v1596_v45 }
  0xae   :  { %v418_v33 = vsel %vm416_vm5, %v417_v46, %v415_v25  ;;  %v1690_v36 = vpop.eup %1218  ;;  %v400_v39 = vmul.f32 %v1207_v34, %v399_v26  ;;  %v384_v4 = vmul.f32 %v1217_v63, %v1616_v24  ;;  %vm390_vm10 = vcmp.eq.f32.partialorder %v1616_v24, inf  ;;  %v1706_v46 = vpop.xlane.xlu0 %324 }
  0xaf   :  { %1224 = vrcp.f32 %v1669_v3  ;;  %v1692_v38 = vmax.f32 %v418_v33, 1e-12  ;;  %v1697_v35 = vpop.eup %1220  ;;  %v720_v34 = vsub.f32 1.5, %v719_v44  ;;  %vm392_vm11 = vcmp.eq.f32.partialorder %v1616_v24, 0.0 }
  0xb0   :  { %1226 = vrsqrt.f32 %v1673_v18  ;;  %v401_v61 = vmul.f32 %v400_v39, %v1587_v37  ;;  %v385_v2 = vmul.f32 %v1217_v63, %v384_v4  ;;  %v1223_v14 = vpop.eup %1222  ;;  %vm711_vm12 = vcmp.eq.f32.partialorder %v1637_v22, inf }
  0xb1   :  { %1228 = vrsqrt.f32 %v1649_v50  ;;  %v721_v33 = vmul.f32 %v1211_v1, %v720_v34  ;;  %v705_v44 = vmul.f32 %v1223_v14, %v1637_v22  ;;  %vm713_vm13 = vcmp.eq.f32.partialorder %v1637_v22, 0.0 }
  0xb2   :  { %1230 = vrcp.f32 %v1692_v38  ;;  %v403_v32 = vsel %vm402_vm6, %v1587_v37, %v401_v61  ;;  %v386_v39 = vmul.f32 0.5, %v385_v2  ;;  %vm906_vm14 = vweird.f32 %v1580_v30 }
  0xb3   :  { %1232 = vrsqrt.f32 %v1695_v5  ;;  %v406_v58 = vsel %vm404_vm7, %v405_v51, %v403_v32  ;;  %v722_v61 = vmul.f32 %v721_v33, %v1596_v45  ;;  %v706_v34 = vmul.f32 %v1223_v14, %v705_v44 }
  0xb4   :  { %1234 = vrsqrt.f32 %v1706_v46  ;;  %v1724_v60 = vmax.f32 %v406_v58, 1e-12  ;;  %v387_v1 = vsub.f32 1.5, %v386_v39  ;;  %v902_v51 = vmul.f32 %v1632_v21, %v1580_v30 }
  0xb5   :  { %v1712_v26 = vpop.eup %1224  ;;  %vm907_vm15 = vweird.f32 %v1632_v21  ;;  %v724_v58 = vsel %vm723_vm8, %v1596_v45, %v722_v61  ;;  %v707_v39 = vmul.f32 0.5, %v706_v34  ;;  %vm699_vm3 = vcmp.eq.f32.partialorder %v1673_v18, inf }
  0xb6   :  { %v1227_v4 = vpop.eup %1226  ;;  %1236 = vrcp.f32 %v1724_v60  ;;  %v388_v33 = vmul.f32 %v1217_v63, %v387_v1  ;;  %v727_v25 = vsel %vm725_vm9, %v726_v54, %v724_v58  ;;  %vm701_vm4 = vcmp.eq.f32.partialorder %v1673_v18, 0.0  ;;  %vm1767_vm9 = vmor %vm906_vm14, %vm907_vm15 }
  0xb7   :  { %v1229_v2 = vpop.eup %1228  ;;  %v693_v37 = vmul.f32 %v1227_v4, %v1673_v18  ;;  %v903_v59 = vsub.f32 1.0, %v902_v51  ;;  %v1744_v0 = vmax.f32 %v727_v25, 1e-12  ;;  %v708_v13 = vsub.f32 1.5, %v707_v39 }
  0xb8   :  { %v1733_v32 = vpop.eup %1230  ;;  %v372_v17 = vmul.f32 %v1229_v2, %v1649_v50  ;;  %v389_v6 = vmul.f32 %v388_v33, %v1616_v24  ;;  %vm378_vm5 = vcmp.eq.f32.partialorder %v1649_v50, inf  ;;  %vm380_vm6 = vcmp.eq.f32.partialorder %v1649_v50, 0.0 }
  0xb9   :  { %v1233_v44 = vpop.eup %1232  ;;  %v694_v27 = vmul.f32 %v1227_v4, %v693_v37  ;;  %vm366_vm7 = vcmp.eq.f32.partialorder %v1695_v5, inf  ;;  %v904_v45 = vmul.f32 %v1632_v21, %v903_v59  ;;  %v910_v54 = vand.u32 2147483647, %v1580_v30 }
  0xba   :  { %v360_v63 = vmul.f32 %v1233_v44, %v1695_v5  ;;  %v1235_v61 = vpop.eup %1234  ;;  %v373_v34 = vmul.f32 %v1229_v2, %v372_v17  ;;  %1238 = vrcp.f32 %v1744_v0  ;;  %v391_v25 = vsel %vm390_vm10, %v1616_v24, %v389_v6 }
  0xbb   :  { %v695_v1 = vmul.f32 0.5, %v694_v27  ;;  %v709_v37 = vmul.f32 %v1223_v14, %v708_v13  ;;  %vm368_vm8 = vcmp.eq.f32.partialorder %v1695_v5, 0.0  ;;  %v2455_v27 = vand.u32 2147483648, %v1616_v24 }
  0xbc   :  { %v361_v51 = vmul.f32 %v1233_v44, %v360_v63  ;;  %v374_v33 = vmul.f32 0.5, %v373_v34  ;;  %v348_v59 = vmul.f32 %v1235_v61, %v1706_v46  ;;  %v1771_v6 = vpop.eup %1236  ;;  %vm354_vm10 = vcmp.eq.f32.partialorder %v1706_v46, inf }
  0xbd   :  { %v394_v17 = vsel %vm392_vm11, %v2455_v27, %v391_v25  ;;  %v696_v58 = vsub.f32 1.5, %v695_v1  ;;  %v710_v14 = vmul.f32 %v709_v37, %v1637_v22  ;;  %v905_v63 = vadd.f32 %v1632_v21, %v904_v45 }
  0xbe   :  { %v1773_v13 = vmax.f32 %v394_v17, 1e-12  ;;  %v362_v24 = vmul.f32 0.5, %v361_v51  ;;  %v375_v34 = vsub.f32 1.5, %v374_v33  ;;  %v349_v25 = vmul.f32 %v1235_v61, %v348_v59 }
  0xbf   :  { %v697_v1 = vmul.f32 %v1227_v4, %v696_v58  ;;  %vm356_vm11 = vcmp.eq.f32.partialorder %v1706_v46, 0.0  ;;  %vm1779_vm14 = vcmp.eq.f32.partialorder %v910_v54, 8.507059e+37  ;;  %v712_v37 = vsel %vm711_vm12, %v1637_v22, %v710_v14 }
  0xc0   :  { %1240 = vrcp.f32 %v1773_v13  ;;  %v363_v51 = vsub.f32 1.5, %v362_v24  ;;  %v909_v45 = vsel %vm1767_vm9, %v1632_v21, %v905_v63  ;;  %v2460_v4 = vand.u32 2147483648, %v1637_v22  ;;  %v1795_v59 = vpop.eup %1238 }
  0xc1   :  { %v698_v54 = vmul.f32 %v697_v1, %v1673_v18  ;;  %v376_v58 = vmul.f32 %v1229_v2, %v375_v34  ;;  %v350_v33 = vmul.f32 0.5, %v349_v25  ;;  %v912_v14 = vand.u32 2147483648, %v1580_v30 }
  0xc2   :  { %v715_v17 = vsel %vm713_vm13, %v2460_v4, %v712_v37  ;;  %v364_v62 = vmul.f32 %v1233_v44, %v363_v51  ;;  %v887_v39 = vmul.f32 %v1675_v20, %v1624_v19  ;;  %vm891_vm12 = vweird.f32 %v1624_v19 }
  0xc3   :  { %v1797_v12 = vmax.f32 %v715_v17, 1e-12  ;;  %v700_v21 = vsel %vm699_vm3, %v1673_v18, %v698_v54  ;;  %v377_v22 = vmul.f32 %v376_v58, %v1649_v50  ;;  %v351_v24 = vsub.f32 1.5, %v350_v33 }
  0xc4   :  { %v2461_v2 = vand.u32 2147483648, %v1673_v18  ;;  %v365_v30 = vmul.f32 %v364_v62, %v1695_v5  ;;  %v913_v63 = vor.u32 1.1754944e-38, %v912_v14  ;;  %v888_v37 = vsub.f32 1.0, %v887_v39 }
  0xc5   :  { %1242 = vrcp.f32 %v1797_v12  ;;  %v379_v34 = vsel %vm378_vm5, %v1649_v50, %v377_v22  ;;  %v352_v25 = vmul.f32 %v1235_v61, %v351_v24  ;;  %v2462_v4 = vand.u32 2147483648, %v1649_v50 }
  0xc6   :  { %v703_v44 = vsel %vm701_vm4, %v2461_v2, %v700_v21  ;;  %v1818_v51 = vpop.eup %1240  ;;  %v367_v62 = vsel %vm366_vm7, %v1695_v5, %v365_v30  ;;  %v914_v18 = vsel %vm1779_vm14, %v913_v63, %v909_v45  ;;  %vm892_vm13 = vweird.f32 %v1675_v20 }
  0xc7   :  { %v1813_v1 = vmax.f32 %v703_v44, 1e-12  ;;  %v382_v17 = vsel %vm380_vm6, %v2462_v4, %v379_v34  ;;  %v2463_v54 = vand.u32 2147483648, %v1695_v5  ;;  %v353_v50 = vmul.f32 %v352_v25, %v1706_v46  ;;  %vm1851_vm15 = vmor %vm891_vm12, %vm892_vm13 }
  0xc8   :  { %v1831_v61 = vmax.f32 %v382_v17, 1e-12  ;;  %v1841_v14 = vmul.f32 %v914_v18, %v1388_v8  ;;  %v889_v27 = vmul.f32 %v1675_v20, %v888_v37  ;;  %v895_v45 = vand.u32 2147483647, %v1624_v19 }
  0xc9   :  { %1244 = vrcp.f32 %v1813_v1  ;;  %v370_v58 = vsel %vm368_vm8, %v2463_v54, %v367_v62  ;;  %v355_v39 = vsel %vm354_vm10, %v1706_v46, %v353_v50  ;;  %v897_v21 = vand.u32 2147483648, %v1624_v19 }
  0xca   :  { %v1838_v33 = vmax.f32 %v370_v58, 1e-12  ;;  %1246 = vrcp.f32 %v1831_v61  ;;  %v557_v8 = vmul.f32 %v1651_v56, %v1598_v48  ;;  %v2466_v24 = vand.u32 2147483648, %v1706_v46  ;;  %1174 = vmatpush.xpose.msk.msra.mxu3 %vm71_vm0, %v1841_v14  ;;  %1142 = vmatpush.xpose.msk.msrb.mxu1 %vm71_vm0, %v1841_v14 }
  0xcb   :  { %v1858_v22 = vpop.eup %1242  ;;  %v890_v44 = vadd.f32 %v1675_v20, %v889_v27  ;;  %vm896_vm3 = vcmp.eq.f32.partialorder %v895_v45, 8.507059e+37  ;;  %v898_v30 = vor.u32 1.1754944e-38, %v897_v21  ;;  %vm561_vm4 = vweird.f32 %v1598_v48 }
  0xcc   :  { %1248 = vrcp.f32 %v1838_v33  ;;  %v358_v2 = vsel %vm356_vm11, %v2466_v24, %v355_v39  ;;  %v558_v63 = vsub.f32 1.0, %v557_v8  ;;  %vm562_vm5 = vweird.f32 %v1651_v56 }
  0xcd   :  { %v1870_v19 = vmax.f32 %v358_v2, 1e-12  ;;  %v894_v46 = vsel %vm1851_vm15, %v1675_v20, %v890_v44  ;;  %v565_v34 = vand.u32 2147483647, %v1598_v48  ;;  %v567_v25 = vand.u32 2147483648, %v1598_v48  ;;  %vm1888_vm6 = vmor %vm561_vm4, %vm562_vm5 }
  0xce   :  { %v899_v4 = vsel %vm896_vm3, %v898_v30, %v894_v46  ;;  %v559_v17 = vmul.f32 %v1651_v56, %v558_v63  ;;  %v872_v62 = vmul.f32 %v1690_v36, %v1635_v57  ;;  %vm876_vm8 = vweird.f32 %v1635_v57 }
  0xcf   :  { %v1879_v37 = vpop.eup %1244  ;;  %1250 = vrcp.f32 %v1870_v19  ;;  %v1886_v18 = vmul.f32 %v899_v4, %v1401_v11  ;;  %vm1892_vm7 = vcmp.eq.f32.partialorder %v565_v34, 8.507059e+37  ;;  %v568_v48 = vor.u32 1.1754944e-38, %v567_v25 }
  0xd0   :  { %v1897_v58 = vpop.eup %1246  ;;  %v560_v50 = vadd.f32 %v1651_v56, %v559_v17  ;;  %v873_v27 = vsub.f32 1.0, %v872_v62  ;;  %vm877_vm9 = vweird.f32 %v1690_v36  ;;  %v880_v11 = vand.u32 2147483647, %v1635_v57 }
  0xd1   :  { %1175 = vmatpush.xpose.msk.msra.mxu3 %vm71_vm0, %v1886_v18  ;;  %v882_v39 = vand.u32 2147483648, %v1635_v57  ;;  %v542_v5 = vmul.f32 %v1667_v49, %v1610_v7  ;;  %vm546_vm10 = vweird.f32 %v1610_v7  ;;  %vm547_vm11 = vweird.f32 %v1667_v49  ;;  %1143 = vmatpush.xpose.msk.msrb.mxu1 %vm71_vm0, %v1886_v18  ;;  %vm1926_vm12 = vmor %vm876_vm8, %vm877_vm9 }
  0xd2   :  { %v1902_v45 = vpop.eup %1248  ;;  %v564_v21 = vsel %vm1888_vm6, %v1651_v56, %v560_v50  ;;  %v874_v8 = vmul.f32 %v1690_v36, %v873_v27  ;;  %vm1917_vm14 = vcmp.eq.f32.partialorder %v880_v11, 8.507059e+37  ;;  %v550_v2 = vand.u32 2147483647, %v1610_v7  ;;  %vm1957_vm4 = vmor %vm546_vm10, %vm547_vm11 }
  0xd3   :  { %v569_v44 = vsel %vm1892_vm7, %v568_v48, %v564_v21  ;;  %v883_v63 = vor.u32 1.1754944e-38, %v882_v39  ;;  %v543_v46 = vsub.f32 1.0, %v542_v5  ;;  %v552_v56 = vand.u32 2147483648, %v1610_v7 }
  0xd4   :  { %v1934_v25 = vmul.f32 %v569_v44, %v1391_v9  ;;  %v875_v4 = vadd.f32 %v1690_v36, %v874_v8  ;;  %vm1937_vm13 = vcmp.eq.f32.partialorder %v550_v2, 8.507059e+37  ;;  %v857_v57 = vmul.f32 %v1697_v35, %v1654_v42 }
  0xd5   :  { %v1931_v34 = vpop.eup %1250  ;;  %v544_v62 = vmul.f32 %v1667_v49, %v543_v46  ;;  %v553_v20 = vor.u32 1.1754944e-38, %v552_v56  ;;  %vm861_vm15 = vweird.f32 %v1654_v42  ;;  %vm862_vm3 = vweird.f32 %v1697_v35 }
  0xd6   :  { %1126 = vmatpush.xpose.msk.msrb.mxu0 %vm71_vm0, %v1934_v25  ;;  %1166 = vmatpush.xpose.msk.msra.mxu2 %vm71_vm0, %v1934_v25  ;;  %v879_v9 = vsel %vm1926_vm12, %v1690_v36, %v875_v4  ;;  %v858_v48 = vsub.f32 1.0, %v857_v57  ;;  %v865_v50 = vand.u32 2147483647, %v1654_v42  ;;  %v867_v27 = vand.u32 2147483648, %v1654_v42  ;;  %vm1984_vm7 = vmor %vm861_vm15, %vm862_vm3 }
  0xd7   :  { %v884_v11 = vsel %vm1917_vm14, %v883_v63, %v879_v9  ;;  %v545_v39 = vadd.f32 %v1667_v49, %v544_v62  ;;  %v527_v36 = vmul.f32 %v1733_v32, %v1692_v38  ;;  %vm531_vm5 = vweird.f32 %v1692_v38 }
  0xd8   :  { %v1970_v7 = vmul.f32 %v884_v11, %v1410_v15  ;;  %v859_v5 = vmul.f32 %v1697_v35, %v858_v48  ;;  %vm1973_vm6 = vcmp.eq.f32.partialorder %v865_v50, 8.507059e+37  ;;  %v868_v8 = vor.u32 1.1754944e-38, %v867_v27 }
  0xd9   :  { %v549_v24 = vsel %vm1957_vm4, %v1667_v49, %v545_v39  ;;  %v528_v15 = vsub.f32 1.0, %v527_v36  ;;  %vm532_vm8 = vweird.f32 %v1733_v32  ;;  %v535_v44 = vand.u32 2147483647, %v1692_v38 }
  0xda   :  { %1176 = vmatpush.xpose.msk.msra.mxu3 %vm71_vm0, %v1970_v7  ;;  %v554_v30 = vsel %vm1937_vm13, %v553_v20, %v549_v24  ;;  %v860_v49 = vadd.f32 %v1697_v35, %v859_v5  ;;  %v537_v63 = vand.u32 2147483648, %v1692_v38  ;;  %1144 = vmatpush.xpose.msk.msrb.mxu1 %vm71_vm0, %v1970_v7  ;;  %v842_v42 = vmul.f32 %v1712_v26, %v1669_v3  ;;  %vm2014_vm11 = vmor %vm531_vm5, %vm532_vm8 }
  0xdb   :  { %v2001_v46 = vmul.f32 %v554_v30, %v1394_v10  ;;  %v529_v56 = vmul.f32 %v1733_v32, %v528_v15  ;;  %vm2004_vm9 = vcmp.eq.f32.partialorder %v535_v44, 8.507059e+37  ;;  %vm846_vm10 = vweird.f32 %v1669_v3 }
  0xdc   :  { %v864_v17 = vsel %vm1984_vm7, %v1697_v35, %v860_v49  ;;  %v538_v10 = vor.u32 1.1754944e-38, %v537_v63  ;;  %v843_v62 = vsub.f32 1.0, %v842_v42  ;;  %vm847_vm14 = vweird.f32 %v1712_v26 }
  0xdd   :  { %1127 = vmatpush.xpose.msk.msrb.mxu0 %vm71_vm0, %v2001_v46  ;;  %1167 = vmatpush.xpose.msk.msra.mxu2 %vm71_vm0, %v2001_v46  ;;  %v869_v20 = vsel %vm1973_vm6, %v868_v8, %v864_v17  ;;  %v530_v35 = vadd.f32 %v1733_v32, %v529_v56  ;;  %v850_v38 = vand.u32 2147483647, %v1669_v3  ;;  %v852_v9 = vand.u32 2147483648, %v1669_v3  ;;  %vm2040_vm13 = vmor %vm846_vm10, %vm847_vm14 }
  0xde   :  { %v2029_v54 = vmul.f32 %v869_v20, %v1413_v16  ;;  %v844_v48 = vmul.f32 %v1712_v26, %v843_v62  ;;  %v512_v50 = vmul.f32 %v1771_v6, %v1724_v60  ;;  %vm516_vm12 = vweird.f32 %v1724_v60 }
  0xdf   :  { %v534_v27 = vsel %vm2014_vm11, %v1733_v32, %v530_v35  ;;  %vm2044_vm15 = vcmp.eq.f32.partialorder %v850_v38, 8.507059e+37  ;;  %v853_v39 = vor.u32 1.1754944e-38, %v852_v9  ;;  %vm517_vm3 = vweird.f32 %v1771_v6 }
  0xe0   :  { %1177 = vmatpush.xpose.msk.msra.mxu3 %vm71_vm0, %v2029_v54  ;;  %v539_v36 = vsel %vm2004_vm9, %v538_v10, %v534_v27  ;;  %v845_v32 = vadd.f32 %v1712_v26, %v844_v48  ;;  %v513_v3 = vsub.f32 1.0, %v512_v50  ;;  %v520_v5 = vand.u32 2147483647, %v1724_v60  ;;  %1145 = vmatpush.xpose.msk.msrb.mxu1 %vm71_vm0, %v2029_v54  ;;  %vm2083_vm7 = vmor %vm516_vm12, %vm517_vm3 }
  0xe1   :  { %v2058_v21 = vmul.f32 %v539_v36, %v1433_v29  ;;  %v522_v8 = vand.u32 2147483648, %v1724_v60  ;;  %v827_v24 = vmul.f32 %v1795_v59, %v1744_v0  ;;  %vm831_vm4 = vweird.f32 %v1744_v0 }
  0xe2   :  { %v849_v2 = vsel %vm2040_vm13, %v1712_v26, %v845_v32  ;;  %v514_v15 = vmul.f32 %v1771_v6, %v513_v3  ;;  %vm2068_vm5 = vcmp.eq.f32.partialorder %v520_v5, 8.507059e+37  ;;  %vm832_vm6 = vweird.f32 %v1795_v59 }
  0xe3   :  { %1128 = vmatpush.xpose.msk.msrb.mxu0 %vm71_vm0, %v2058_v21  ;;  %1168 = vmatpush.xpose.msk.msra.mxu2 %vm71_vm0, %v2058_v21  ;;  %v854_v29 = vsel %vm2044_vm15, %v853_v39, %v849_v2  ;;  %v523_v30 = vor.u32 1.1754944e-38, %v522_v8  ;;  %v828_v49 = vsub.f32 1.0, %v827_v24  ;;  %v835_v63 = vand.u32 2147483647, %v1744_v0  ;;  %vm2111_vm11 = vmor %vm831_vm4, %vm832_vm6 }
  0xe4   :  { %v2089_v42 = vmul.f32 %v854_v29, %v1430_v28  ;;  %v515_v56 = vadd.f32 %v1771_v6, %v514_v15  ;;  %v837_v4 = vand.u32 2147483648, %v1744_v0  ;;  %v497_v17 = vmul.f32 %v1818_v51, %v1773_v13 }
  0xe5   :  { %v829_v60 = vmul.f32 %v1795_v59, %v828_v49  ;;  %vm2096_vm8 = vcmp.eq.f32.partialorder %v835_v63, 8.507059e+37  ;;  %vm501_vm9 = vweird.f32 %v1773_v13  ;;  %vm502_vm10 = vweird.f32 %v1818_v51 }
  0xe6   :  { %1178 = vmatpush.xpose.msk.msra.mxu3 %vm71_vm0, %v2089_v42  ;;  %v519_v28 = vsel %vm2083_vm7, %v1771_v6, %v515_v56  ;;  %v838_v62 = vor.u32 1.1754944e-38, %v837_v4  ;;  %v498_v20 = vsub.f32 1.0, %v497_v17  ;;  %v505_v35 = vand.u32 2147483647, %v1773_v13  ;;  %1146 = vmatpush.xpose.msk.msrb.mxu1 %vm71_vm0, %v2089_v42  ;;  %vm2140_vm13 = vmor %vm501_vm9, %vm502_vm10 }
  0xe7   :  { %v524_v38 = vsel %vm2068_vm5, %v523_v30, %v519_v28  ;;  %v830_v6 = vadd.f32 %v1795_v59, %v829_v60  ;;  %v507_v9 = vand.u32 2147483648, %v1773_v13  ;;  %v812_v0 = vmul.f32 %v1858_v22, %v1797_v12 }
  0xe8   :  { %v2125_v48 = vmul.f32 %v524_v38, %v1437_v31  ;;  %v499_v50 = vmul.f32 %v1818_v51, %v498_v20  ;;  %vm2128_vm14 = vcmp.eq.f32.partialorder %v505_v35, 8.507059e+37  ;;  %vm816_vm12 = vweird.f32 %v1797_v12 }
  0xe9   :  { %v834_v11 = vsel %vm2111_vm11, %v1795_v59, %v830_v6  ;;  %v508_v31 = vor.u32 1.1754944e-38, %v507_v9  ;;  %v813_v39 = vsub.f32 1.0, %v812_v0  ;;  %vm817_vm15 = vweird.f32 %v1858_v22 }
  0xea   :  { %1129 = vmatpush.xpose.msk.msrb.mxu0 %vm71_vm0, %v2125_v48  ;;  %1169 = vmatpush.xpose.msk.msra.mxu2 %vm71_vm0, %v2125_v48  ;;  %v839_v59 = vsel %vm2096_vm8, %v838_v62, %v834_v11  ;;  %v500_v36 = vadd.f32 %v1818_v51, %v499_v50  ;;  %v820_v13 = vand.u32 2147483647, %v1797_v12  ;;  %v822_v32 = vand.u32 2147483648, %v1797_v12  ;;  %vm2166_vm4 = vmor %vm816_vm12, %vm817_vm15 }
  0xeb   :  { %v2155_v3 = vmul.f32 %v839_v59, %v1451_v40  ;;  %v814_v5 = vmul.f32 %v1858_v22, %v813_v39  ;;  %v482_v8 = vmul.f32 %v1897_v58, %v1831_v61  ;;  %vm486_vm3 = vweird.f32 %v1831_v61 }
  0xec   :  { %v504_v24 = vsel %vm2140_vm13, %v1818_v51, %v500_v36  ;;  %vm2170_vm5 = vcmp.eq.f32.partialorder %v820_v13, 8.507059e+37  ;;  %v823_v15 = vor.u32 1.1754944e-38, %v822_v32  ;;  %vm487_vm6 = vweird.f32 %v1897_v58 }
  0xed   :  { %1179 = vmatpush.xpose.msk.msra.mxu3 %vm71_vm0, %v2155_v3  ;;  %v509_v44 = vsel %vm2128_vm14, %v508_v31, %v504_v24  ;;  %v815_v51 = vadd.f32 %v1858_v22, %v814_v5  ;;  %v483_v12 = vsub.f32 1.0, %v482_v8  ;;  %v490_v29 = vand.u32 2147483647, %v1831_v61  ;;  %1147 = vmatpush.xpose.msk.msrb.mxu1 %vm71_vm0, %v2155_v3  ;;  %vm2209_vm10 = vmor %vm486_vm3, %vm487_vm6 }
  0xee   :  { %v2184_v26 = vmul.f32 %v509_v44, %v1454_v41  ;;  %v492_v30 = vand.u32 2147483648, %v1831_v61  ;;  %v797_v49 = vmul.f32 %v1879_v37, %v1813_v1  ;;  %vm801_vm7 = vweird.f32 %v1813_v1 }
  0xef   :  { %v819_v63 = vsel %vm2166_vm4, %v1858_v22, %v815_v51  ;;  %v484_v56 = vmul.f32 %v1897_v58, %v483_v12  ;;  %vm2194_vm8 = vcmp.eq.f32.partialorder %v490_v29, 8.507059e+37  ;;  %vm802_vm9 = vweird.f32 %v1879_v37  ;;  %v2521_v29 = vld [vmem:[#allocation11_spill] sm:$0xff] }
  0xf0   :  { %1130 = vmatpush.xpose.msk.msrb.mxu0 %vm71_vm0, %v2184_v26  ;;  %1170 = vmatpush.xpose.msk.msra.mxu2 %vm71_vm0, %v2184_v26  ;;  %v824_v41 = vsel %vm2170_vm5, %v823_v15, %v819_v63  ;;  %v493_v17 = vor.u32 1.1754944e-38, %v492_v30  ;;  %v798_v60 = vsub.f32 1.0, %v797_v49  ;;  %v805_v57 = vand.u32 2147483647, %v1813_v1  ;;  %vm2237_vm13 = vmor %vm801_vm7, %vm802_vm9 }
  0xf1   :  { %v2215_v28 = vmul.f32 %v824_v41, %v1458_v43  ;;  %v485_v10 = vadd.f32 %v1897_v58, %v484_v56  ;;  %v807_v62 = vand.u32 2147483648, %v1813_v1  ;;  %v467_v20 = vmul.f32 %v1902_v45, %v1838_v33  ;;  %v2523_v41 = vld [vmem:[#allocation15_spill] sm:$0xff] }
  0xf2   :  { %v799_v61 = vmul.f32 %v1879_v37, %v798_v60  ;;  %vm2222_vm11 = vcmp.eq.f32.partialorder %v805_v57, 8.507059e+37  ;;  %vm471_vm14 = vweird.f32 %v1838_v33  ;;  %vm472_vm12 = vweird.f32 %v1902_v45 }
  0xf3   :  { %1180 = vmatpush.xpose.msk.msra.mxu3 %vm71_vm0, %v2215_v28  ;;  %v489_v43 = vsel %vm2209_vm10, %v1897_v58, %v485_v10  ;;  %v808_v6 = vor.u32 1.1754944e-38, %v807_v62  ;;  %v468_v9 = vsub.f32 1.0, %v467_v20  ;;  %v475_v0 = vand.u32 2147483647, %v1838_v33  ;;  %1148 = vmatpush.xpose.msk.msrb.mxu1 %vm71_vm0, %v2215_v28  ;;  %vm2266_vm4 = vmor %vm471_vm14, %vm472_vm12 }
  0xf4   :  { %v494_v50 = vsel %vm2194_vm8, %v493_v17, %v489_v43  ;;  %v800_v58 = vadd.f32 %v1879_v37, %v799_v61  ;;  %v477_v27 = vand.u32 2147483648, %v1838_v33  ;;  %v452_v1 = vmul.f32 %v1931_v34, %v1870_v19 }
  0xf5   :  { %v2251_v11 = vmul.f32 %v494_v50, %v1475_v53  ;;  %v469_v16 = vmul.f32 %v1902_v45, %v468_v9  ;;  %vm2254_vm15 = vcmp.eq.f32.partialorder %v475_v0, 8.507059e+37  ;;  %vm456_vm3 = vweird.f32 %v1870_v19 }
  0xf6   :  { %v804_v39 = vsel %vm2237_vm13, %v1879_v37, %v800_v58  ;;  %v478_v53 = vor.u32 1.1754944e-38, %v477_v27  ;;  %v453_v36 = vsub.f32 1.0, %v452_v1  ;;  %vm457_vm5 = vweird.f32 %v1931_v34 }
  0xf7   :  { %1131 = vmatpush.xpose.msk.msrb.mxu0 %vm71_vm0, %v2251_v11  ;;  %1171 = vmatpush.xpose.msk.msra.mxu2 %vm71_vm0, %v2251_v11  ;;  %v809_v37 = vsel %vm2222_vm11, %v808_v6, %v804_v39  ;;  %v470_v13 = vadd.f32 %v1902_v45, %v469_v16  ;;  %v460_v33 = vand.u32 2147483647, %v1870_v19  ;;  %v462_v32 = vand.u32 2147483648, %v1870_v19  ;;  %vm458_vm6 = vmor %vm456_vm3, %vm457_vm5  ;;  %v2525_v16 = vld [vmem:[#allocation13_spill] sm:$0xff] }
  0xf8   :  { %v916_v5 = vmul.f32 %v809_v37, %v1472_v52  ;;  %v454_v8 = vmul.f32 %v1931_v34, %v453_v36  ;;  %v2519_v40 = vrot.slane %v1592_v47, 2  ;;  %v208_v22 = vmul.f32 2.0, %v2523_v41 }
  0xf9   :  { %v474_v24 = vsel %vm2266_vm4, %v1902_v45, %v470_v13  ;;  %v463_v2 = vor.u32 1.1754944e-38, %v462_v32  ;;  %vm461_vm7 = vcmp.eq.f32.partialorder %v460_v33, 8.507059e+37  ;;  %v2520_v45 = vrot.slane %v1605_v23, 2 }
  0xfa   :  { %v204_v15 = vadd.f32 %v2519_v40, %v1592_v47  ;;  %1181 = vmatpush.xpose.msk.msra.mxu3 %vm71_vm0, %v916_v5  ;;  %v479_v44 = vsel %vm2254_vm15, %v478_v53, %v474_v24  ;;  %v455_v52 = vadd.f32 %v1931_v34, %v454_v8  ;;  %1149 = vmatpush.xpose.msk.msrb.mxu1 %vm71_vm0, %v916_v5 }
  0xfb   :  { %v103_v19 = vadd.f32 %v2520_v45, %v1605_v23  ;;  %v572_v51 = vmul.f32 %v479_v44, %v1479_v55 }
  0xfc   :  { %v459_v12 = vsel %vm458_vm6, %v1931_v34, %v455_v52  ;;  %v205_v49 = vrot.slane %v204_v15, 1  ;;  %v2358_v52 = vshra.s32 %v2525_v16, 3 }
  0xfd   :  { %1153 = vmatmul.msk.f32.vlgmr.msra.gmra.mxu3 %vm71_vm0, %v2089_v42  ;;  %1132 = vmatpush.xpose.msk.msrb.mxu0 %vm71_vm0, %v572_v51  ;;  %v464_v47 = vsel %vm461_vm7, %v463_v2, %v459_v12  ;;  %v104_v63 = vrot.slane %v103_v19, 1  ;;  %v2522_v42 = vld [vmem:[#allocation14_spill] sm:$0xff] }
  0xfe   :  { %1172 = vmatpush.xpose.msk.msra.mxu2 %vm71_vm0, %v572_v51  ;;  %v571_v30 = vmul.f32 %v464_v47, %v2521_v29  ;;  %1150 = vmatmul.msk.f32.vlgmr.msrb.gmra.mxu1 %vm71_vm0, %v916_v5  ;;  %v206_v55 = vadd.f32 %v205_v49, %v204_v15  ;;  %v107_v4 = vmul.f32 2.0, %v2522_v42 }
  0xff   :  { %v105_v23 = vadd.f32 %v104_v63, %v103_v19 }
 0x101   :  { %1133 = vmatpush.xpose.msk.msrb.mxu0 %vm71_vm0, %v571_v30 }
 0x102   :  { %1173 = vmatpush.xpose.msk.msra.mxu2 %vm71_vm0, %v571_v30  ;;  %v200_v34 = vpop.xlane.xlu2 %199  ;;  %v99_v56 = vpop.xlane.xlu1 %98 }
 0x103   :  { %v207_v17 = vadd.f32 %v206_v55, %v200_v34  ;;  %v106_v60 = vadd.f32 %v105_v23, %v99_v56 }
 0x104   :  { %1134 = vmatmul.msk.f32.vlgmr.msrb.gmra.mxu0 %vm71_vm0, %v571_v30 }
 0x105   :  { %1138 = vmatmul.msk.f32.vlgmr.msra.gmra.mxu2 %vm71_vm0, %v2125_v48  ;;  %1154 = vmatmul.msk.f32.gmra.mxu3 %vm71_vm0, %v2029_v54  ;;  %v209_v57 = vsub.f32 %v207_v17, %v208_v22  ;;  %v108_v10 = vsub.f32 %v106_v60, %v107_v4 }
 0x106   :  { %1151 = vmatmul.msk.f32.gmra.mxu1 %vm71_vm0, %v2215_v28 }
 0x107   :  { %v210_v62 = vmax.f32 %v209_v57, 1e-12  ;;  %v109_v20 = vmax.f32 %v108_v10, 1e-12 }
 0x109   :  { %1252 = vrsqrt.f32 %v210_v62  ;;  %vm218_vm8 = vcmp.eq.f32.partialorder %v210_v62, inf  ;;  %v221_v50 = vand.u32 2147483648, %v210_v62  ;;  %vm220_vm9 = vcmp.eq.f32.partialorder %v210_v62, 0.0 }
 0x10a   :  { %1254 = vrsqrt.f32 %v109_v20  ;;  %vm117_vm10 = vcmp.eq.f32.partialorder %v109_v20, inf  ;;  %vm119_vm11 = vcmp.eq.f32.partialorder %v109_v20, 0.0 }
 0x10c   :  { %1135 = vmatmul.msk.f32.gmra.mxu0 %vm71_vm0, %v572_v51 }
 0x10d   :  { %1139 = vmatmul.msk.f32.gmra.mxu2 %vm71_vm0, %v2058_v21  ;;  %1155 = vmatmul.msk.f32.gmra.mxu3 %vm71_vm0, %v1970_v7 }
 0x10e   :  { %1152 = vmatmul.msk.f32.gmra.mxu1 %vm71_vm0, %v2155_v3 }
 0x10f   :  { %v1253_v54 = vpop.eup %1252 }
 0x110   :  { %v1255_v48 = vpop.eup %1254  ;;  %v212_v28 = vmul.f32 %v1253_v54, %v210_v62 }
 0x111   :  { %v111_v61 = vmul.f32 %v1255_v48, %v109_v20 }
 0x112   :  { %v213_v35 = vmul.f32 %v1253_v54, %v212_v28 }
 0x113   :  { %v112_v43 = vmul.f32 %v1255_v48, %v111_v61 }
 0x114   :  { %1136 = vmatmul.msk.f32.gmra.mxu0 %vm71_vm0, %v2251_v11  ;;  %v214_v21 = vmul.f32 0.5, %v213_v35  ;;  %v2524_v11 = vld [vmem:[#allocation12_spill] sm:$0xff] }
 0x115   :  { %1140 = vmatmul.msk.f32.gmra.mxu2 %vm71_vm0, %v2001_v46  ;;  %1156 = vmatmul.msk.f32.gmra.mxu3 %vm71_vm0, %v1886_v18  ;;  %v113_v7 = vmul.f32 0.5, %v112_v43  ;;  %v120_v46 = vand.u32 2147483648, %v109_v20  ;;  %v54_v15 = vshra.s32 %v2524_v11, 3  ;;  %v47_v47 = vadd.s32 8, %v2524_v11 }
 0x116   :  { %v215_v38 = vsub.f32 1.5, %v214_v21  ;;  %v48_v41 = vadd.s32 16, %v2524_v11  ;;  %v50_v22 = vadd.s32 32, %v2524_v11 }
 0x117   :  { %v114_v6 = vsub.f32 1.5, %v113_v7  ;;  %vm63_vm13 = vcmp.eq.s32.totalorder %v54_v15, %v2358_v52  ;;  %v55_v42 = vshra.s32 %v47_v47, 3 }
 0x118   :  { %v216_v3 = vmul.f32 %v1253_v54, %v215_v38  ;;  %v56_v35 = vshra.s32 %v48_v41, 3  ;;  %v58_v43 = vshra.s32 %v50_v22, 3 }
 0x119   :  { %v115_v9 = vmul.f32 %v1255_v48, %v114_v6  ;;  %vm2366_vm3 = vcmp.eq.s32.totalorder %v55_v42, %v2358_v52  ;;  %v52_v42 = vadd.s32 48, %v2524_v11 }
 0x11a   :  { %v217_v0 = vmul.f32 %v216_v3, %v210_v62  ;;  %vm2376_vm5 = vcmp.eq.s32.totalorder %v58_v43, %v2358_v52  ;;  %vm2381_vm6 = vcmp.eq.s32.totalorder %v56_v35, %v2358_v52 }
 0x11b   :  { %v116_v58 = vmul.f32 %v115_v9, %v109_v20 }
 0x11c   :  { %1137 = vmatmul.msk.f32.gmra.mxu0 %vm71_vm0, %v2184_v26  ;;  %v219_v18 = vsel %vm218_vm8, %v210_v62, %v217_v0  ;;  %v49_v0 = vadd.s32 24, %v2524_v11 }
 0x11d   :  { %1141 = vmatmul.msk.f32.gmra.mxu2 %vm71_vm0, %v1934_v25  ;;  %1157 = vmatmul.msk.f32.gmra.mxu3 %vm71_vm0, %v1841_v14  ;;  %v222_v27 = vsel %vm220_vm9, %v221_v50, %v219_v18  ;;  %v118_v1 = vsel %vm117_vm10, %v109_v20, %v116_v58  ;;  %v1348_v14 = vmov 0.0   ;;  %v51_v18 = vadd.s32 40, %v2524_v11 }
 0x11e   :  { %v2339_v26 = vsel %vm46_vm1, 0.0, %v222_v27  ;;  %v121_v31 = vsel %vm119_vm11, %v120_v46, %v118_v1 }
 0x11f   :  { %vm224_vm14 = vcmp.gt.f32.partialorder %v2339_v26, 0.0  ;;  %v2345_v25 = vsel %vm46_vm1, 0.0, %v121_v31 }
 0x120   :  { %v235_v39 = vsel %vm224_vm14, 1.0, %v1348_v14  ;;  %vm123_vm12 = vcmp.gt.f32.partialorder %v2345_v25, 0.0  ;;  %v225_v33 = vsel %vm224_vm14, %v2339_v26, 0.0 }
 0x121   :  { %v236_v59 = vsel %vm96_vm2, %v235_v39, 0.0  ;;  %v134_v53 = vsel %vm123_vm12, 1.0, %v1348_v14  ;;  %v124_v36 = vsel %vm123_vm12, %v2345_v25, 0.0  ;;  %v226_v32 = vsel %vm96_vm2, %v225_v33, 0.0 }
 0x122   :  { %237 = vadd.xlane.f32.xlu1 %v236_v59  ;;  %v135_v37 = vsel %vm96_vm2, %v134_v53, 0.0  ;;  %v125_v13 = vsel %vm96_vm2, %v124_v36, 0.0  ;;  %v57_v59 = vshra.s32 %v49_v0, 3 }
 0x123   :  { %136 = vadd.xlane.f32.xlu0 %v135_v37  ;;  %126 = vadd.xlane.f32.xlu2 %v125_v13 }
 0x124   :  { %vm2401_vm10 = vcmp.eq.s32.totalorder %v57_v59, %v2358_v52 }
 0x12b   :  { %227 = vadd.xlane.f32.xlu0 %v226_v32  ;;  %v59_v32 = vshra.s32 %v51_v18, 3 }
 0x12d   :  { %vm2395_vm9 = vcmp.eq.s32.totalorder %v59_v32, %v2358_v52 }
 0x17b   :  { %v965_v5 = vpop.f32.mrf.mxu1 }
 0x180   :  { %v2354_v8 = vpop.f32.mrf.mxu3 }
 0x181   :  { %v620_v24 = vpop.f32.mrf.mxu0 }
 0x182   :  { %v989_v2 = vsub.f32 %v620_v24, %v965_v5  ;;  %v53_v5 = vadd.s32 56, %v2524_v11 }
 0x183   :  { %v968_v44 = vpop.f32.mrf.mxu1 }
 0x184   :  { %v997_v40 = vand.u32 2147483647, %v989_v2 }
 0x186   :  { %v1013_v45 = vmul.f32 0.5, %v997_v40  ;;  %v1158_v19 = vadd.f32 -0.5, %v997_v40  ;;  %vm1005_vm1 = vcmp.lt.f32.partialorder %v997_v40, 1.0 }
 0x188   :  { %v632_v51 = vpop.f32.mrf.mxu2  ;;  %v977_v12 = vpop.f32.mrf.mxu3  ;;  %v1021_v29 = vmul.f32 %v1013_v45, %v997_v40 }
 0x189   :  { %v993_v30 = vsub.f32 %v632_v51, %v977_v12  ;;  %v623_v49 = vpop.f32.mrf.mxu0 }
 0x18a   :  { %v990_v63 = vsub.f32 %v623_v49, %v968_v44  ;;  %v1037_v55 = vsel %vm1005_vm1, %v1021_v29, %v1158_v19 }
 0x18b   :  { %v1001_v23 = vand.u32 2147483647, %v993_v30  ;;  %v1045_v34 = vsel %vm63_vm13, %v1037_v55, 0.0  ;;  %v971_v10 = vpop.f32.mrf.mxu1 }
 0x18c   :  { %v998_v56 = vand.u32 2147483647, %v990_v63  ;;  %v1053_v4 = vsel %vm71_vm0, %v1045_v34, 0.0 }
 0x18d   :  { %1054 = vadd.xlane.f32.xlu1 %v1053_v4  ;;  %v1017_v57 = vmul.f32 0.5, %v1001_v23  ;;  %v1162_v6 = vadd.f32 -0.5, %v1001_v23  ;;  %vm1009_vm4 = vcmp.lt.f32.partialorder %v1001_v23, 1.0 }
 0x18e   :  { %v1014_v17 = vmul.f32 0.5, %v998_v56  ;;  %v1159_v60 = vadd.f32 -0.5, %v998_v56  ;;  %vm1006_vm15 = vcmp.lt.f32.partialorder %v998_v56, 1.0 }
 0x18f   :  { %v1025_v38 = vmul.f32 %v1017_v57, %v1001_v23 }
 0x190   :  { %v635_v62 = vpop.f32.mrf.mxu2  ;;  %v980_v20 = vpop.f32.mrf.mxu3  ;;  %v1022_v48 = vmul.f32 %v1014_v17, %v998_v56 }
 0x191   :  { %v994_v28 = vsub.f32 %v635_v62, %v980_v20  ;;  %v626_v61 = vpop.f32.mrf.mxu0  ;;  %v1041_v16 = vsel %vm1009_vm4, %v1025_v38, %v1162_v6  ;;  %v60_v38 = vshra.s32 %v52_v42, 3 }
 0x192   :  { %v991_v21 = vsub.f32 %v626_v61, %v971_v10  ;;  %v1038_v7 = vsel %vm1006_vm15, %v1022_v48, %v1159_v60  ;;  %v1049_v15 = vsel %vm2376_vm5, %v1041_v16, 0.0  ;;  %v61_v61 = vshra.s32 %v53_v5, 3 }
 0x193   :  { %v1002_v3 = vand.u32 2147483647, %v994_v28  ;;  %v1046_v9 = vsel %vm2366_vm3, %v1038_v7, 0.0  ;;  %v1065_v23 = vsel %vm71_vm0, %v1049_v15, 0.0  ;;  %vm2420_vm1 = vcmp.eq.s32.totalorder %v60_v38, %v2358_v52 }
 0x194   :  { %v999_v50 = vand.u32 2147483647, %v991_v21  ;;  %v1056_v58 = vsel %vm71_vm0, %v1046_v9, 0.0  ;;  %vm2415_vm12 = vcmp.eq.s32.totalorder %v61_v61, %v2358_v52 }
 0x195   :  { %1057 = vadd.xlane.f32.xlu2 %v1056_v58  ;;  %v1018_v31 = vmul.f32 0.5, %v1002_v3  ;;  %v238_v14 = vpop.xlane.xlu1 %237  ;;  %v1163_v44 = vadd.f32 -0.5, %v1002_v3  ;;  %vm1010_vm8 = vcmp.lt.f32.partialorder %v1002_v3, 1.0 }
 0x196   :  { %v1015_v27 = vmul.f32 0.5, %v999_v50  ;;  %v1160_v1 = vadd.f32 -0.5, %v999_v50  ;;  %vm1007_vm7 = vcmp.lt.f32.partialorder %v999_v50, 1.0  ;;  %v239_v53 = vrot.slane %v238_v14, 4  ;;  %v137_v36 = vpop.xlane.xlu0 %136  ;;  %v127_v56 = vpop.xlane.xlu2 %126 }
 0x197   :  { %v138_v24 = vrot.slane %v137_v36, 4  ;;  %v1026_v12 = vmul.f32 %v1018_v31, %v1002_v3  ;;  %v128_v62 = vrot.slane %v127_v56, 4 }
 0x198   :  { %v638_v37 = vpop.f32.mrf.mxu2  ;;  %v983_v13 = vpop.f32.mrf.mxu3  ;;  %v1023_v33 = vmul.f32 %v1015_v27, %v999_v50  ;;  %v240_v45 = vadd.f32 %v239_v53, %v238_v14 }
 0x199   :  { %v995_v2 = vsub.f32 %v638_v37, %v983_v13  ;;  %v629_v40 = vpop.f32.mrf.mxu0  ;;  %v139_v47 = vadd.f32 %v138_v24, %v137_v36  ;;  %v1042_v22 = vsel %vm1010_vm8, %v1026_v12, %v1163_v44  ;;  %v129_v50 = vadd.f32 %v128_v62, %v127_v56 }
 0x19a   :  { %v992_v19 = vsub.f32 %v629_v40, %v2354_v8  ;;  %v1039_v51 = vsel %vm1007_vm7, %v1023_v33, %v1160_v1  ;;  %v241_v49 = vrot.slane %v240_v45, 2  ;;  %v1050_v11 = vsel %vm2395_vm9, %v1042_v22, 0.0 }
 0x19b   :  { %v1003_v29 = vand.u32 2147483647, %v995_v2  ;;  %v1047_v30 = vsel %vm2381_vm6, %v1039_v51, 0.0  ;;  %v140_v34 = vrot.slane %v139_v47, 2  ;;  %v1068_v18 = vsel %vm71_vm0, %v1050_v11, 0.0 }
 0x19c   :  { %v1000_v63 = vand.u32 2147483647, %v992_v19  ;;  %v1059_v55 = vsel %vm71_vm0, %v1047_v30, 0.0  ;;  %v242_v4 = vadd.f32 %v241_v49, %v240_v45  ;;  %v130_v53 = vrot.slane %v129_v50, 2 }
 0x19d   :  { %1060 = vadd.xlane.f32.xlu0 %v1059_v55  ;;  %1066 = vadd.xlane.f32.xlu2 %v1065_v23  ;;  %v1019_v17 = vmul.f32 0.5, %v1003_v29  ;;  %v141_v60 = vadd.f32 %v140_v34, %v139_v47  ;;  %v1164_v46 = vadd.f32 -0.5, %v1003_v29  ;;  %vm1011_vm14 = vcmp.lt.f32.partialorder %v1003_v29, 1.0 }
 0x19e   :  { %v1016_v41 = vmul.f32 0.5, %v1000_v63  ;;  %v243_v10 = vrot.slane %v242_v4, 1  ;;  %v1161_v28 = vadd.f32 -0.5, %v1000_v63  ;;  %vm1008_vm11 = vcmp.lt.f32.partialorder %v1000_v63, 1.0  ;;  %v228_v27 = vpop.xlane.xlu0 %227 }
 0x19f   :  { %v142_v35 = vrot.slane %v141_v60, 1  ;;  %v1027_v6 = vmul.f32 %v1019_v17, %v1003_v29  ;;  %v229_v36 = vrot.slane %v228_v27, 4  ;;  %v131_v15 = vadd.f32 %v130_v53, %v129_v50 }
 0x1a0   :  { %v641_v20 = vpop.f32.mrf.mxu2  ;;  %v986_v54 = vpop.f32.mrf.mxu3  ;;  %v1024_v48 = vmul.f32 %v1016_v41, %v1000_v63  ;;  %v2407_v21 = vadd.f32 %v243_v10, %v242_v4 }
 0x1a1   :  { %v996_v43 = vsub.f32 %v641_v20, %v986_v54  ;;  %v143_v3 = vadd.f32 %v142_v35, %v141_v60  ;;  %v1043_v14 = vsel %vm1011_vm14, %v1027_v6, %v1164_v46  ;;  %v230_v32 = vadd.f32 %v229_v36, %v228_v27 }
 0x1a2   :  { %v1040_v7 = vsel %vm1008_vm11, %v1024_v48, %v1161_v28  ;;  %1256 = vrcp.f32 %v2407_v21  ;;  %v1051_v33 = vsel %vm2420_vm1, %v1043_v14, 0.0  ;;  %v256_v47 = vand.u32 2147483648, %v2407_v21 }
 0x1a3   :  { %v1004_v9 = vand.u32 2147483647, %v996_v43  ;;  %v1048_v0 = vsel %vm2401_vm10, %v1040_v7, 0.0  ;;  %1258 = vrcp.f32 %v143_v3  ;;  %v231_v44 = vrot.slane %v230_v32, 2 }
 0x1a4   :  { %v1062_v58 = vsel %vm71_vm0, %v1048_v0, 0.0  ;;  %v1071_v45 = vsel %vm71_vm0, %v1051_v33, 0.0  ;;  %v153_v12 = vand.u32 2147483647, %v143_v3  ;;  %v155_v30 = vand.u32 2147483648, %v143_v3 }
 0x1a5   :  { %1063 = vadd.xlane.f32.xlu1 %v1062_v58  ;;  %1069 = vadd.xlane.f32.xlu0 %v1068_v18  ;;  %v1020_v1 = vmul.f32 0.5, %v1004_v9  ;;  %v1165_v59 = vadd.f32 -0.5, %v1004_v9  ;;  %vm1012_vm13 = vcmp.lt.f32.partialorder %v1004_v9, 1.0  ;;  %v232_v29 = vadd.f32 %v231_v44, %v230_v32 }
 0x1a6   :  { %v254_v63 = vand.u32 2147483647, %v2407_v21  ;;  %v132_v23 = vrot.slane %v131_v15, 1  ;;  %vm250_vm4 = vweird.f32 %v2407_v21  ;;  %v257_v42 = vor.u32 1.1754944e-38, %v256_v47 }
 0x1a7   :  { %v1028_v39 = vmul.f32 %v1020_v1, %v1004_v9  ;;  %v233_v34 = vrot.slane %v232_v29, 1  ;;  %v156_v4 = vor.u32 1.1754944e-38, %v155_v30  ;;  %vm154_vm8 = vcmp.eq.f32.partialorder %v153_v12, 8.507059e+37 }
 0x1a8   :  { %v1257_v37 = vpop.eup %1256  ;;  %vm255_vm7 = vcmp.eq.f32.partialorder %v254_v63, 8.507059e+37  ;;  %v133_v60 = vadd.f32 %v132_v23, %v131_v15  ;;  %v1349_v47 = vmov 512.0  }
 0x1a9   :  { %v1044_v13 = vsel %vm1012_vm13, %v1028_v39, %v1165_v59  ;;  %v1259_v5 = vpop.eup %1258  ;;  %v246_v52 = vmul.f32 %v1257_v37, %v2407_v21  ;;  %vm251_vm15 = vweird.f32 %v1257_v37  ;;  %v234_v22 = vadd.f32 %v233_v34, %v232_v29 }
 0x1aa   :  { %v1052_v24 = vsel %vm2415_vm12, %v1044_v13, 0.0  ;;  %v145_v40 = vmul.f32 %v1259_v5, %v143_v3  ;;  %vm150_vm3 = vweird.f32 %v1259_v5  ;;  %vm252_vm5 = vmor %vm250_vm4, %vm251_vm15  ;;  %v1350_v29 = vmov 64.0  }
 0x1ab   :  { %v1074_v2 = vsel %vm71_vm0, %v1052_v24, 0.0  ;;  %v247_v19 = vsub.f32 1.0, %v246_v52  ;;  %vm149_vm0 = vweird.f32 %v143_v3 }
 0x1ac   :  { %1075 = vadd.xlane.f32.xlu2 %v1074_v2  ;;  %v146_v51 = vsub.f32 1.0, %v145_v40  ;;  %vm151_vm6 = vmor %vm149_vm0, %vm150_vm3  ;;  %vm1101_vm0 = vcmask 0  }
 0x1ad   :  { %1072 = vadd.xlane.f32.xlu1 %v1071_v45  ;;  %v248_v49 = vmul.f32 %v1257_v37, %v247_v19 }
 0x1ae   :  { %v147_v55 = vmul.f32 %v1259_v5, %v146_v51 }
 0x1af   :  { %v249_v56 = vadd.f32 %v1257_v37, %v248_v49 }
 0x1b0   :  { %v148_v8 = vadd.f32 %v1259_v5, %v147_v55 }
 0x1b1   :  { %v253_v41 = vsel %vm252_vm5, %v1257_v37, %v249_v56 }
 0x1b2   :  { %v152_v17 = vsel %vm151_vm6, %v1259_v5, %v148_v8  ;;  %v258_v57 = vsel %vm255_vm7, %v257_v42, %v253_v41 }
 0x1b3   :  { %v157_v10 = vsel %vm154_vm8, %v156_v4, %v152_v17  ;;  %v259_v62 = vmul.f32 %v258_v57, %v234_v22 }
 0x1b4   :  { %v158_v20 = vmul.f32 %v157_v10, %v133_v60 }
 0x1b5   :  { %1260 = vrcp.f32 %v259_v62  ;;  %v271_v11 = vand.u32 2147483648, %v259_v62  ;;  %v269_v38 = vand.u32 2147483647, %v259_v62  ;;  %vm265_vm11 = vweird.f32 %v259_v62 }
 0x1b6   :  { %1262 = vrcp.f32 %v158_v20  ;;  %v170_v7 = vand.u32 2147483648, %v158_v20  ;;  %v168_v3 = vand.u32 2147483647, %v158_v20  ;;  %vm164_vm14 = vweird.f32 %v158_v20 }
 0x1b7   :  { %v272_v50 = vor.u32 1.1754944e-38, %v271_v11  ;;  %vm270_vm13 = vcmp.eq.f32.partialorder %v269_v38, 8.507059e+37  ;;  %1264 = vrcp.f32 %v1349_v47 }
 0x1b8   :  { %v171_v58 = vor.u32 1.1754944e-38, %v170_v7  ;;  %vm169_vm15 = vcmp.eq.f32.partialorder %v168_v3, 8.507059e+37  ;;  %1266 = vrcp.f32 %v1350_v29 }
 0x1bb   :  { %v1261_v54 = vpop.eup %1260 }
 0x1bc   :  { %v1263_v48 = vpop.eup %1262  ;;  %v261_v28 = vmul.f32 %v1261_v54, %v259_v62  ;;  %vm266_vm9 = vweird.f32 %v1261_v54 }
 0x1bd   :  { %v160_v61 = vmul.f32 %v1263_v48, %v158_v20  ;;  %vm165_vm10 = vweird.f32 %v1263_v48  ;;  %vm267_vm12 = vmor %vm265_vm11, %vm266_vm9  ;;  %v1265_v49 = vpop.eup %1264 }
 0x1be   :  { %v262_v35 = vsub.f32 1.0, %v261_v28  ;;  %vm166_vm1 = vmor %vm164_vm14, %vm165_vm10  ;;  %v1267_v63 = vpop.eup %1266  ;;  %v1091_v23 = vmul.f32 512.0, %v1265_v49 }
 0x1bf   :  { %v161_v43 = vsub.f32 1.0, %v160_v61  ;;  %v292_v34 = vmul.f32 64.0, %v1267_v63  ;;  %vm296_vm4 = vweird.f32 %v1267_v63 }
 0x1c0   :  { %v263_v21 = vmul.f32 %v1261_v54, %v262_v35  ;;  %v1092_v8 = vsub.f32 1.0, %v1091_v23 }
 0x1c1   :  { %v162_v6 = vmul.f32 %v1263_v48, %v161_v43  ;;  %v293_v42 = vsub.f32 1.0, %v292_v34 }
 0x1c2   :  { %v264_v9 = vadd.f32 %v1261_v54, %v263_v21  ;;  %v1093_v22 = vmul.f32 %v1265_v49, %v1092_v8 }
 0x1c3   :  { %v163_v0 = vadd.f32 %v1263_v48, %v162_v6  ;;  %v294_v60 = vmul.f32 %v1267_v63, %v293_v42 }
 0x1c4   :  { %v268_v18 = vsel %vm267_vm12, %v1261_v54, %v264_v9  ;;  %v1094_v62 = vadd.f32 %v1265_v49, %v1093_v22 }
 0x1c5   :  { %v167_v46 = vsel %vm166_vm1, %v1263_v48, %v163_v0  ;;  %v273_v27 = vsel %vm270_vm13, %v272_v50, %v268_v18  ;;  %v295_v54 = vadd.f32 %v1267_v63, %v294_v60 }
 0x1c6   :  { %v172_v1 = vsel %vm169_vm15, %v171_v58, %v167_v46  ;;  %v274_v16 = vmul.f32 %v273_v27, %v2339_v26 }
 0x1c7   :  { %v173_v31 = vmul.f32 %v172_v1, %v2345_v25  ;;  %v297_v43 = vsel %vm296_vm4, %v1267_v63, %v295_v54 }
 0x1c9   :  { %v275_v14 = vsub.f32 %v173_v31, %v274_v16 }
 0x1cb   :  { %v276_v39 = vand.u32 2147483647, %v275_v14 }
 0x1cd   :  { %v278_v59 = vmul.f32 0.5, %v276_v39  ;;  %v1125_v36 = vadd.f32 -0.5, %v276_v39  ;;  %vm277_vm3 = vcmp.lt.f32.partialorder %v276_v39, 1.0 }
 0x1cf   :  { %v279_v53 = vmul.f32 %v278_v59, %v276_v39 }
 0x1d1   :  { %v281_v37 = vsel %vm277_vm3, %v279_v53, %v1125_v36 }
 0x1d2   :  { %v282_v13 = vsel %vm96_vm2, %v281_v37, 0.0  ;;  %vm1095_vm2 = vweird.f32 %v1265_v49 }
 0x1d3   :  { %283 = vadd.xlane.f32.xlu0 %v282_v13  ;;  %v1096_v61 = vsel %vm1095_vm2, %v1265_v49, %v1094_v62 }
 0x200   :  { %v1055_v33 = vpop.xlane.xlu1 %1054 }
 0x208   :  { %v1058_v32 = vpop.xlane.xlu2 %1057 }
 0x209   :  { %v1077_v5 = vadd.f32 %v1058_v32, %v1055_v33 }
 0x210   :  { %v1061_v24 = vpop.xlane.xlu0 %1060  ;;  %v1067_v26 = vpop.xlane.xlu2 %1066 }
 0x211   :  { %v1078_v2 = vadd.f32 %v1077_v5, %v1061_v24 }
 0x218   :  { %v1064_v52 = vpop.xlane.xlu1 %1063  ;;  %v1070_v25 = vpop.xlane.xlu0 %1069 }
 0x219   :  { %v1079_v40 = vadd.f32 %v1078_v2, %v1064_v52 }
 0x21b   :  { %v1080_v15 = vadd.f32 %v1079_v40, %v1067_v26 }
 0x21d   :  { %v1081_v45 = vadd.f32 %v1080_v15, %v1070_v25 }
 0x21f   :  { %v1076_v51 = vpop.xlane.xlu2 %1075 }
 0x220   :  { %v1073_v44 = vpop.xlane.xlu1 %1072 }
 0x221   :  { %v1082_v19 = vadd.f32 %v1081_v45, %v1073_v44 }
 0x223   :  { %v1083_v12 = vadd.f32 %v1082_v19, %v1076_v51 }
 0x225   :  { %v1084_v30 = vrot.slane %v1083_v12, 4 }
 0x227   :  { %v1085_v55 = vadd.f32 %v1084_v30, %v1083_v12 }
 0x229   :  { %v1086_v56 = vrot.slane %v1085_v55, 2 }
 0x22b   :  { %v1087_v4 = vadd.f32 %v1086_v56, %v1085_v55 }
 0x22d   :  { %v1088_v57 = vrot.slane %v1087_v4, 1 }
 0x22f   :  { %v1089_v48 = vadd.f32 %v1088_v57, %v1087_v4 }
 0x231   :  { %v1097_v21 = vmul.f32 %v1096_v61, %v1089_v48 }
 0x233   :  { %v1099_v6 = vmul.f32 50.0, %v1097_v21 }
 0x246   :  { %v284_v41 = vpop.xlane.xlu0 %283 }
 0x247   :  { %v285_v17 = vrot.slane %v284_v41, 4 }
 0x249   :  { %v286_v10 = vadd.f32 %v285_v17, %v284_v41 }
 0x24b   :  { %v287_v20 = vrot.slane %v286_v10, 2 }
 0x24d   :  { %v288_v28 = vadd.f32 %v287_v20, %v286_v10 }
 0x24f   :  { %v289_v35 = vrot.slane %v288_v28, 1 }
 0x251   :  { %v290_v11 = vadd.f32 %v289_v35, %v288_v28 }
 0x253   :  { %v298_v7 = vmul.f32 %v297_v43, %v290_v11 }
 0x255   :  { %v1098_v38 = vmul.f32 25.0, %v298_v7 }
 0x257   :  { %v1100_v3 = vadd.f32 %v1099_v6, %v1098_v38 }
 0x259   :  { %1102 = vst.msk [vmem:[#allocation7] sm:$0x1] %vm1101_vm0, %v1100_v3 }
 0x25a   :  { %1113 = dma.vmem_to_hbm [thread:$0]  %s1109_s1, 16, %s1111_s21, [#allocation4]  }
 0x25b   :  { %1344 = dma.done.wait [#allocation4], 16  }
 0x25c   :  { %1345 = vsyncadd [#allocation4], 4294967280 }
 0x25d   :  { %1118 = vsyncpa [#allocation3], 1 }
 0x25e   :  { %1119 = vsyncpa [#allocation6], 1 }
 0x25f   :  { %1120 = vsyncpa [#allocation4], 1 }

</bundles_post_ra>
